<compile_context>
chip_gen: v6e
topology: v6e:2x2x1
jax: 0.10.0
libtpu: 0.0.40
codegen_flags: <defaults>
</compile_context>

<pallas_src>
import functools
from math import sqrt

import jax
import jax.numpy as jnp
from jax import lax
from jax.experimental import pallas as pl
from jax.experimental.pallas import tpu as pltpu

_MASK_VALUE = -1e30  # large finite negative; avoids inf-inf NaN paths


def _round_up(x, m):
    return ((x + m - 1) // m) * m


def _attn_kernel(q_ref, k_ref, v_ref, o_ref, *rest,
                 scale, causal, heads, e_dim, d_dim, s_real, mask_pad_keys,
                 out_attn, bf16_matmul):
    # q_ref: (1, Lt, H*E)   k_ref: (1, Kt, H*E)   v_ref: (1, Kt, H*D)
    # o_ref: (1, Lt, H*D)   a_ref (optional): (1, H, Lt, S_pad)
    # scratch: acc (Lt, H*D) f32, m (H, Lt, 1) f32, l (H, Lt, 1) f32
    if out_attn:
        a_ref, acc_ref, m_ref, l_ref = rest
    else:
        a_ref = None
        acc_ref, m_ref, l_ref = rest

    lt = q_ref.shape[1]
    kt = k_ref.shape[1]
    ki = pl.program_id(2)
    n_k = pl.num_programs(2)
    q_start = pl.program_id(1) * lt
    k_start = ki * kt

    in_dtype = jnp.dtype(q_ref.dtype)
    if bf16_matmul:
        mm_dtype = jnp.bfloat16
        precision = None
    else:
        mm_dtype = in_dtype
        # Keep f32 PyTorch matmul numerics (avoid bf16 demotion of f32 dots).
        precision = (lax.Precision.HIGHEST
                     if in_dtype == jnp.dtype(jnp.float32) else None)

    @pl.when(ki == 0)
    def _init():
        acc_ref[...] = jnp.zeros_like(acc_ref)
        m_ref[...] = jnp.full_like(m_ref, _MASK_VALUE)
        l_ref[...] = jnp.zeros_like(l_ref)

    def _compute():
        q_all = q_ref[0]                                  # (Lt, H*E)
        k_all = k_ref[0]                                  # (Kt, H*E)
        v_all = v_ref[0]                                  # (Kt, H*D)
        if bf16_matmul and in_dtype != jnp.dtype(jnp.bfloat16):
            # Cast each block element once per step (not once per head).
            q_all = q_all.astype(jnp.bfloat16)
            k_all = k_all.astype(jnp.bfloat16)
            v_all = v_all.astype(jnp.bfloat16)

        need_mask = causal or mask_pad_keys
        if need_mask:
            rows = lax.broadcasted_iota(jnp.int32, (lt, kt), 0) + q_start
            cols = lax.broadcasted_iota(jnp.int32, (lt, kt), 1) + k_start
            if causal and mask_pad_keys:
                masked = jnp.logical_or(cols > rows, cols >= s_real)
            elif causal:
                masked = cols > rows
            else:
                masked = cols >= s_real

        for h in range(heads):
            q_h = q_all[:, h * e_dim:(h + 1) * e_dim]     # (Lt, E)
            k_h = k_all[:, h * e_dim:(h + 1) * e_dim]     # (Kt, E)
            v_h = v_all[:, h * d_dim:(h + 1) * d_dim]     # (Kt, D)

            # scores = q_h @ k_h^T via a last-dim contraction (no transpose).
            s = lax.dot_general(
                q_h, k_h,
                dimension_numbers=(((1,), (1,)), ((), ())),
                precision=precision,
                preferred_element_type=jnp.float32)       # (Lt, Kt) f32
            s = s * scale                                 # scale AFTER the dot
            if need_mask:
                s = jnp.where(masked, _MASK_VALUE, s)

            # Online (flash) softmax update.
            m_prev = m_ref[h]                             # (Lt, 1)
            l_prev = l_ref[h]
            m_new = jnp.maximum(m_prev, jnp.max(s, axis=-1, keepdims=True))
            p = jnp.exp(s - m_new)                        # (Lt, Kt)
            alpha = jnp.exp(m_prev - m_new)               # (Lt, 1)
            l_new = alpha * l_prev + jnp.sum(p, axis=-1, keepdims=True)
            m_ref[h] = m_new
            l_ref[h] = l_new

            pv = jnp.dot(p.astype(mm_dtype), v_h,
                         precision=precision,
                         preferred_element_type=jnp.float32)   # (Lt, D)
            sl = slice(h * d_dim, (h + 1) * d_dim)
            acc_ref[:, sl] = alpha * acc_ref[:, sl] + pv

            if out_attn:
                # Single key tile in this mode, so l_new is the full
                # softmax denominator already.
                a_ref[0, h] = (p / l_new).astype(a_ref.dtype)

    if causal:
        # Causal tile skipping: a key tile starting past the last query row
        # of this q tile contributes nothing.
        pl.when(k_start <= q_start + lt - 1)(_compute)
    else:
        _compute()

    @pl.when(ki == n_k - 1)
    def _finalize():
        for h in range(heads):
            sl = slice(h * d_dim, (h + 1) * d_dim)
            acc_ref[:, sl] = acc_ref[:, sl] / l_ref[h]
        # One lane-dense full-width store of the (Lt, H*D) slab.
        o_ref[0] = acc_ref[...].astype(o_ref.dtype)


def _vmem_capacity_bytes():
    try:
        cap = int(pltpu.get_tpu_info().vmem_capacity_bytes)
        if cap > 0:
            return cap
    except Exception:
        pass
    return 64 * 1024 * 1024  # conservative fallback: v7x per-TensorCore VMEM


def full_attention(queries, keys, values, attn_mask=None, *,
                   mask_flag=True, scale=None, output_attention=False,
                   bf16_matmul=None, q_tile=None, k_tile=None):
    """Pallas equivalent of Informer FullAttention.forward (inference mode).

    queries: (B, L, H, E); keys: (B, S, H, E); values: (B, S, H, D)
    Returns (V, A): V (B, L, H, D); A (B, H, L, S) float32 or None.
    """
    if attn_mask is not None:
        # TODO(synk): explicit attn_mask tensors are not supported.
        raise NotImplementedError("only the built-in causal mask is supported")

    B, L, H, E = queries.shape
    _, S, _, D = values.shape
    scale_val = float(scale) if scale is not None else 1.0 / sqrt(E)
    if bf16_matmul is None:
        bf16_matmul = (jnp.dtype(queries.dtype) == jnp.dtype(jnp.bfloat16))

    itemsize = jnp.dtype(queries.dtype).itemsize
    cap = _vmem_capacity_bytes()
    budget = int(0.7 * cap)
    big_vmem = cap >= (96 << 20)            # v5e/v6e (128 MiB) vs v7x (64 MiB)
    lt_target = 256 if big_vmem else 128
    kt_target = 512 if big_vmem else 256

    lt = q_tile if q_tile else lt_target
    lt = _round_up(min(lt, _round_up(L, 16)), 16)
    if output_attention:
        kt = _round_up(S, 16)               # single key tile: A needs full rows
    else:
        kt = k_tile if k_tile else kt_target
        kt = _round_up(min(kt, _round_up(S, 16)), 16)

    def _vmem_est(lt_, kt_):
        # Double-buffered Q/K/V/O blocks + scratch + live softmax slabs.
        blk = 2 * (lt_ * H * E + kt_ * H * E + kt_ * H * D + lt_ * H * D) * itemsize
        scratch = lt_ * H * D * 4 + 2 * H * lt_ * 128 * 4   # acc + lane-padded m/l
        live = 4 * lt_ * kt_ * 4                            # scores/p/mask/exp slabs
        if output_attention:
            blk += 2 * H * lt_ * kt_ * 4                    # A block (f32), 2 buffers
        return blk + scratch + live

    if not output_attention:
        while _vmem_est(lt, kt) > budget and kt > 128:
            kt = max(128, _round_up(kt // 2, 16))
    while _vmem_est(lt, kt) > budget and lt > 16:
        lt = max(16, _round_up(lt // 2, 16))

    L_pad = _round_up(L, lt)
    S_pad = _round_up(S, kt)
    n_q = L_pad // lt
    n_k = S_pad // kt
    mask_pad_keys = (S_pad != S)

    # Free trailing-dim merges (no transposes), then pad to tile multiples.
    q2 = queries.reshape(B, L, H * E)
    k2 = keys.reshape(B, S, H * E)
    v2 = values.reshape(B, S, H * D)
    if L_pad != L:
        q2 = jnp.pad(q2, ((0, 0), (0, L_pad - L), (0, 0)))
    if S_pad != S:
        k2 = jnp.pad(k2, ((0, 0), (0, S_pad - S), (0, 0)))
        v2 = jnp.pad(v2, ((0, 0), (0, S_pad - S), (0, 0)))

    kernel = functools.partial(
        _attn_kernel,
        scale=scale_val, causal=bool(mask_flag), heads=H,
        e_dim=E, d_dim=D, s_real=S, mask_pad_keys=mask_pad_keys,
        out_attn=bool(output_attention), bf16_matmul=bool(bf16_matmul))

    in_specs = [
        pl.BlockSpec((1, lt, H * E), lambda b, qi, ki: (b, qi, 0)),
        pl.BlockSpec((1, kt, H * E), lambda b, qi, ki: (b, ki, 0)),
        pl.BlockSpec((1, kt, H * D), lambda b, qi, ki: (b, ki, 0)),
    ]
    o_shape = jax.ShapeDtypeStruct((B, L_pad, H * D), queries.dtype)
    o_spec = pl.BlockSpec((1, lt, H * D), lambda b, qi, ki: (b, qi, 0))
    if output_attention:
        out_shape = (o_shape,
                     jax.ShapeDtypeStruct((B, H, L_pad, S_pad), jnp.float32))
        out_specs = (o_spec,
                     pl.BlockSpec((1, H, lt, S_pad), lambda b, qi, ki: (b, 0, qi, 0)))
    else:
        out_shape = o_shape
        out_specs = o_spec

    scratch_shapes = [
        pltpu.VMEM((lt, H * D), jnp.float32),   # acc (lane-dense output slab)
        pltpu.VMEM((H, lt, 1), jnp.float32),    # m (running max) per head
        pltpu.VMEM((H, lt, 1), jnp.float32),    # l (running denom) per head
    ]

    # Always set an explicit, generation-clamped VMEM limit.
    needed = _vmem_est(lt, kt)
    vmem_limit = int(min(max(int(needed * 1.5), 32 * 1024 * 1024),
                         int(0.9 * cap)))

    result = pl.pallas_call(
        kernel,
        out_shape=out_shape,
        grid_spec=pltpu.PrefetchScalarGridSpec(
            num_scalar_prefetch=0,
            grid=(B, n_q, n_k),
            in_specs=in_specs,
            out_specs=out_specs,
            scratch_shapes=scratch_shapes,
        ),
        compiler_params=pltpu.CompilerParams(
            # Batch-axis megacore split only (avoid duplicate K/V streaming).
            dimension_semantics=("parallel", "arbitrary", "arbitrary"),
            vmem_limit_bytes=vmem_limit,
        ),
    )(q2, k2, v2)

    if output_attention:
        out_v, out_a = result
        A = out_a[:, :, :L, :S]
    else:
        out_v, A = result, None

    V = out_v[:, :L, :].reshape(B, L, H, D)
    return V, A


def _reference(queries, keys, values, *, mask_flag=True, scale=None):
    B, L, H, E = queries.shape
    _, S, _, D = values.shape
    scale_val = scale if scale is not None else 1.0 / sqrt(E)
    scores = jnp.einsum('blhe,bshe->bhls',
                        queries.astype(jnp.float32), keys.astype(jnp.float32),
                        precision=lax.Precision.HIGHEST)
    if mask_flag:
        causal = jnp.triu(jnp.ones((L, S), dtype=bool), k=1)
        scores = jnp.where(causal[None, None], -jnp.inf, scores)
    A = jax.nn.softmax(scale_val * scores, axis=-1)
    V = jnp.einsum('bhls,bshd->blhd', A, values.astype(jnp.float32),
                   precision=lax.Precision.HIGHEST)
    return V.astype(values.dtype), A


if __name__ == "__main__":
    key = jax.random.PRNGKey(0)
    B, L, S, H, E, D = 2, 8, 8, 4, 32, 32
    kq, kk, kv = jax.random.split(key, 3)
    queries = jax.random.normal(kq, (B, L, H, E), dtype=jnp.float32)
    keys = jax.random.normal(kk, (B, S, H, E), dtype=jnp.float32)
    values = jax.random.normal(kv, (B, S, H, D), dtype=jnp.float32)

    V_ref, A_ref = _reference(queries, keys, values, mask_flag=True)
    V_ref_nc, _ = _reference(queries, keys, values, mask_flag=False)

    # 1) Causal, inference default: flash path, no A output compiled/written.
    V1, A1 = full_attention(queries, keys, values, None,
                            mask_flag=True, output_attention=False)
    V1 = jax.block_until_ready(V1)
    assert A1 is None and V1.shape == (B, L, H, D)
    assert jnp.allclose(V1, V_ref, atol=2e-3, rtol=2e-3)

    # 2) Causal, with attention-matrix output.
    V2, A2 = full_attention(queries, keys, values, None,
                            mask_flag=True, output_attention=True)
    V2 = jax.block_until_ready(V2)
    A2 = jax.block_until_ready(A2)
    assert V2.shape == (B, L, H, D) and A2.shape == (B, H, L, S)
    assert jnp.allclose(V2, V_ref, atol=2e-3, rtol=2e-3)
    assert jnp.allclose(A2, A_ref, atol=2e-3, rtol=2e-3)

    # 3) Non-causal (cross-attention style) path.
    V3, A3 = full_attention(queries, keys, values, None,
                            mask_flag=False, output_attention=False)
    V3 = jax.block_until_ready(V3)
    assert A3 is None
    assert jnp.allclose(V3, V_ref_nc, atol=2e-3, rtol=2e-3)

    print("KERNEL_OK")
</pallas_src>

<mosaic_0001>
module attributes {stable_mosaic.version = 11 : i64} {
  func.func @_attn_kernel(%arg0: i32, %arg1: i32, %arg2: i32, %arg3: memref<1x16x128xf32, #tpu.memory_space<vmem>>, %arg4: memref<1x16x128xf32, #tpu.memory_space<vmem>>, %arg5: memref<1x16x128xf32, #tpu.memory_space<vmem>>, %arg6: memref<1x16x128xf32, #tpu.memory_space<vmem>>, %arg7: memref<16x128xf32, #tpu.memory_space<vmem>>, %arg8: memref<4x16x1xf32, #tpu.memory_space<vmem>>, %arg9: memref<4x16x1xf32, #tpu.memory_space<vmem>>) attributes {dimension_semantics = [#tpu.dimension_semantics<parallel>, #tpu.dimension_semantics<arbitrary>, #tpu.dimension_semantics<arbitrary>], iteration_bounds = array<i64: 2, 1, 1>, scalar_prefetch = 0 : i64, scratch_operands = 3 : i64, tpu.core_type = #tpu.core_type<tc>, window_params = [{transform_indices = @transform_0, window_bounds = array<i64: 1, 16, 128>}, {transform_indices = @transform_1, window_bounds = array<i64: 1, 16, 128>}, {transform_indices = @transform_2, window_bounds = array<i64: 1, 16, 128>}, {transform_indices = @transform_3, window_bounds = array<i64: 1, 16, 128>}]} {
    %c16_i32 = arith.constant 16 : i32
    %0 = arith.muli %arg1, %c16_i32 : i32
    %c16_i32_0 = arith.constant 16 : i32
    %1 = arith.muli %arg2, %c16_i32_0 : i32
    %c0_i32 = arith.constant 0 : i32
    %2 = arith.cmpi eq, %arg2, %c0_i32 : i32
    %3 = arith.extui %2 : i1 to i32
    %c0_i32_1 = arith.constant 0 : i32
    %4 = arith.cmpi ne, %3, %c0_i32_1 : i32
    scf.if %4 {
      %cst = arith.constant 0.000000e+00 : f32
      %13 = vector.broadcast %cst : f32 to vector<16x128xf32>
      %c0 = arith.constant 0 : index
      %c0_6 = arith.constant 0 : index
      %14 = vector.load %arg7[%c0, %c0_6] : memref<16x128xf32, #tpu.memory_space<vmem>>, vector<16x128xf32>
      tpu.vector_store %arg7[%c0, %c0_6], %13 {strides = array<i32>} : memref<16x128xf32, #tpu.memory_space<vmem>>, vector<16x128xf32>,
      %cst_7 = arith.constant -1.000000e+30 : f32
      %15 = vector.broadcast %cst_7 : f32 to vector<4x16x1xf32>
      %c0_8 = arith.constant 0 : index
      %c0_9 = arith.constant 0 : index
      %c0_10 = arith.constant 0 : index
      %16 = vector.load %arg8[%c0_8, %c0_9, %c0_10] : memref<4x16x1xf32, #tpu.memory_space<vmem>>, vector<4x16x1xf32>
      tpu.vector_store %arg8[%c0_8, %c0_9, %c0_10], %15 {strides = array<i32>} : memref<4x16x1xf32, #tpu.memory_space<vmem>>, vector<4x16x1xf32>,
      %cst_11 = arith.constant 0.000000e+00 : f32
      %17 = vector.broadcast %cst_11 : f32 to vector<4x16x1xf32>
      %c0_12 = arith.constant 0 : index
      %c0_13 = arith.constant 0 : index
      %c0_14 = arith.constant 0 : index
      %18 = vector.load %arg9[%c0_12, %c0_13, %c0_14] : memref<4x16x1xf32, #tpu.memory_space<vmem>>, vector<4x16x1xf32>
      tpu.vector_store %arg9[%c0_12, %c0_13, %c0_14], %17 {strides = array<i32>} : memref<4x16x1xf32, #tpu.memory_space<vmem>>, vector<4x16x1xf32>,
    } else {
    }
    %c16_i32_2 = arith.constant 16 : i32
    %5 = arith.addi %0, %c16_i32_2 : i32
    %c1_i32 = arith.constant 1 : i32
    %6 = arith.subi %5, %c1_i32 : i32
    %7 = arith.cmpi sle, %1, %6 : i32
    %8 = arith.extui %7 : i1 to i32
    %c0_i32_3 = arith.constant 0 : i32
    %9 = arith.cmpi ne, %8, %c0_i32_3 : i32
    scf.if %9 {
      %c0 = arith.constant 0 : index
      %c0_6 = arith.constant 0 : index
      %c0_7 = arith.constant 0 : index
      %13 = vector.load %arg3[%c0, %c0_6, %c0_7] : memref<1x16x128xf32, #tpu.memory_space<vmem>>, vector<1x16x128xf32>
      %14 = vector.shape_cast %13 : vector<1x16x128xf32> to vector<16x128xf32>
      %c0_8 = arith.constant 0 : index
      %c0_9 = arith.constant 0 : index
      %c0_10 = arith.constant 0 : index
      %15 = vector.load %arg4[%c0_8, %c0_9, %c0_10] : memref<1x16x128xf32, #tpu.memory_space<vmem>>, vector<1x16x128xf32>
      %16 = vector.shape_cast %15 : vector<1x16x128xf32> to vector<16x128xf32>
      %c0_11 = arith.constant 0 : index
      %c0_12 = arith.constant 0 : index
      %c0_13 = arith.constant 0 : index
      %17 = vector.load %arg5[%c0_11, %c0_12, %c0_13] : memref<1x16x128xf32, #tpu.memory_space<vmem>>, vector<1x16x128xf32>
      %18 = vector.shape_cast %17 : vector<1x16x128xf32> to vector<16x128xf32>
      %19 = tpu.iota {dimensions = array<i32: 0>} : vector<16x16xi32>
      %20 = vector.broadcast %0 : i32 to vector<16x16xi32>
      %21 = arith.addi %19, %20 : vector<16x16xi32>
      %22 = tpu.iota {dimensions = array<i32: 1>} : vector<16x16xi32>
      %23 = vector.broadcast %1 : i32 to vector<16x16xi32>
      %24 = arith.addi %22, %23 : vector<16x16xi32>
      %25 = arith.cmpi sgt, %24, %21 : vector<16x16xi32>
      %c8_i32 = arith.constant 8 : i32
      %26 = vector.broadcast %c8_i32 : i32 to vector<16x16xi32>
      %27 = arith.cmpi sge, %24, %26 : vector<16x16xi32>
      %28 = arith.ori %25, %27 : vector<16x16xi1>
      %29 = vector.extract_strided_slice %14 {offsets = [0, 0], sizes = [16, 32], strides = [1, 1]} : vector<16x128xf32> to vector<16x32xf32>
      %30 = vector.extract_strided_slice %16 {offsets = [0, 0], sizes = [16, 32], strides = [1, 1]} : vector<16x128xf32> to vector<16x32xf32>
      %31 = vector.extract_strided_slice %18 {offsets = [0, 0], sizes = [16, 32], strides = [1, 1]} : vector<16x128xf32> to vector<16x32xf32>
      %cst = arith.constant dense<0.000000e+00> : vector<16x16xf32>
      %32 = tpu.matmul %29, %30, %cst {dimension_numbers = #tpu.dot_dimension_numbers<[1], [1], [0], [0], [0, 0, 1, 0], [], []>, precision = #tpu.contract_precision<fp32>} : vector<16x32xf32>, vector<16x32xf32>, vector<16x16xf32> -> vector<16x16xf32>
      %cst_14 = arith.constant 0.176776692 : f32
      %33 = vector.broadcast %cst_14 : f32 to vector<16x16xf32>
      %34 = arith.mulf %32, %33 : vector<16x16xf32>
      %cst_15 = arith.constant -1.000000e+30 : f32
      %35 = vector.broadcast %cst_15 : f32 to vector<16x16xf32>
      %36 = arith.select %28, %35, %34 : vector<16x16xi1>, vector<16x16xf32>
      %c0_16 = arith.constant 0 : index
      %c0_17 = arith.constant 0 : index
      %c0_18 = arith.constant 0 : index
      %37 = vector.load %arg8[%c0_16, %c0_17, %c0_18] : memref<4x16x1xf32, #tpu.memory_space<vmem>>, vector<1x16x1xf32>
      %38 = vector.shape_cast %37 : vector<1x16x1xf32> to vector<16x1xf32>
      %c0_19 = arith.constant 0 : index
      %c0_20 = arith.constant 0 : index
      %c0_21 = arith.constant 0 : index
      %39 = vector.load %arg9[%c0_19, %c0_20, %c0_21] : memref<4x16x1xf32, #tpu.memory_space<vmem>>, vector<1x16x1xf32>
      %40 = vector.shape_cast %39 : vector<1x16x1xf32> to vector<16x1xf32>
      %cst_22 = arith.constant dense<0xFF800000> : vector<16xf32>
      %41 = vector.multi_reduction <maximumf>, %36, %cst_22 [1] : vector<16x16xf32> to vector<16xf32>
      %42 = vector.shape_cast %41 : vector<16xf32> to vector<16x1xf32>
      %43 = arith.maximumf %38, %42 : vector<16x1xf32>
      %44 = vector.broadcast %43 : vector<16x1xf32> to vector<16x16xf32>
      %45 = arith.subf %36, %44 : vector<16x16xf32>
      %46 = math.exp %45 : vector<16x16xf32>
      %47 = arith.subf %38, %43 : vector<16x1xf32>
      %48 = math.exp %47 : vector<16x1xf32>
      %49 = arith.mulf %48, %40 : vector<16x1xf32>
      %cst_23 = arith.constant dense<0.000000e+00> : vector<16xf32>
      %50 = vector.multi_reduction <add>, %46, %cst_23 [1] : vector<16x16xf32> to vector<16xf32>
      %51 = vector.shape_cast %50 : vector<16xf32> to vector<16x1xf32>
      %52 = arith.addf %49, %51 : vector<16x1xf32>
      %c0_24 = arith.constant 0 : index
      %c0_25 = arith.constant 0 : index
      %c0_26 = arith.constant 0 : index
      %53 = vector.load %arg8[%c0_24, %c0_25, %c0_26] : memref<4x16x1xf32, #tpu.memory_space<vmem>>, vector<1x16x1xf32>
      %54 = vector.shape_cast %53 : vector<1x16x1xf32> to vector<16x1xf32>
      %55 = vector.shape_cast %43 : vector<16x1xf32> to vector<1x16x1xf32>
      tpu.vector_store %arg8[%c0_24, %c0_25, %c0_26], %55 {strides = array<i32>} : memref<4x16x1xf32, #tpu.memory_space<vmem>>, vector<1x16x1xf32>,
      %c0_27 = arith.constant 0 : index
      %c0_28 = arith.constant 0 : index
      %c0_29 = arith.constant 0 : index
      %56 = vector.load %arg9[%c0_27, %c0_28, %c0_29] : memref<4x16x1xf32, #tpu.memory_space<vmem>>, vector<1x16x1xf32>
      %57 = vector.shape_cast %56 : vector<1x16x1xf32> to vector<16x1xf32>
      %58 = vector.shape_cast %52 : vector<16x1xf32> to vector<1x16x1xf32>
      tpu.vector_store %arg9[%c0_27, %c0_28, %c0_29], %58 {strides = array<i32>} : memref<4x16x1xf32, #tpu.memory_space<vmem>>, vector<1x16x1xf32>,
      %cst_30 = arith.constant dense<0.000000e+00> : vector<16x32xf32>
      %59 = tpu.matmul %46, %31, %cst_30 {dimension_numbers = #tpu.dot_dimension_numbers<[1], [0], [0], [1], [0, 0, 1, 1], [], []>, precision = #tpu.contract_precision<fp32>} : vector<16x16xf32>, vector<16x32xf32>, vector<16x32xf32> -> vector<16x32xf32>
      %c0_31 = arith.constant 0 : index
      %c0_32 = arith.constant 0 : index
      %60 = vector.load %arg7[%c0_31, %c0_32] : memref<16x128xf32, #tpu.memory_space<vmem>>, vector<16x32xf32>
      %61 = vector.broadcast %48 : vector<16x1xf32> to vector<16x32xf32>
      %62 = arith.mulf %61, %60 : vector<16x32xf32>
      %63 = arith.addf %62, %59 : vector<16x32xf32>
      %c0_33 = arith.constant 0 : index
      %c0_34 = arith.constant 0 : index
      %64 = vector.load %arg7[%c0_33, %c0_34] : memref<16x128xf32, #tpu.memory_space<vmem>>, vector<16x32xf32>
      tpu.vector_store %arg7[%c0_33, %c0_34], %63 {strides = array<i32>} : memref<16x128xf32, #tpu.memory_space<vmem>>, vector<16x32xf32>,
      %65 = vector.extract_strided_slice %14 {offsets = [0, 32], sizes = [16, 32], strides = [1, 1]} : vector<16x128xf32> to vector<16x32xf32>
      %66 = vector.extract_strided_slice %16 {offsets = [0, 32], sizes = [16, 32], strides = [1, 1]} : vector<16x128xf32> to vector<16x32xf32>
      %67 = vector.extract_strided_slice %18 {offsets = [0, 32], sizes = [16, 32], strides = [1, 1]} : vector<16x128xf32> to vector<16x32xf32>
      %cst_35 = arith.constant dense<0.000000e+00> : vector<16x16xf32>
      %68 = tpu.matmul %65, %66, %cst_35 {dimension_numbers = #tpu.dot_dimension_numbers<[1], [1], [0], [0], [0, 0, 1, 0], [], []>, precision = #tpu.contract_precision<fp32>} : vector<16x32xf32>, vector<16x32xf32>, vector<16x16xf32> -> vector<16x16xf32>
      %cst_36 = arith.constant 0.176776692 : f32
      %69 = vector.broadcast %cst_36 : f32 to vector<16x16xf32>
      %70 = arith.mulf %68, %69 : vector<16x16xf32>
      %cst_37 = arith.constant -1.000000e+30 : f32
      %71 = vector.broadcast %cst_37 : f32 to vector<16x16xf32>
      %72 = arith.select %28, %71, %70 : vector<16x16xi1>, vector<16x16xf32>
      %c1 = arith.constant 1 : index
      %c0_38 = arith.constant 0 : index
      %c0_39 = arith.constant 0 : index
      %73 = vector.load %arg8[%c1, %c0_38, %c0_39] : memref<4x16x1xf32, #tpu.memory_space<vmem>>, vector<1x16x1xf32>
      %74 = vector.shape_cast %73 : vector<1x16x1xf32> to vector<16x1xf32>
      %c1_40 = arith.constant 1 : index
      %c0_41 = arith.constant 0 : index
      %c0_42 = arith.constant 0 : index
      %75 = vector.load %arg9[%c1_40, %c0_41, %c0_42] : memref<4x16x1xf32, #tpu.memory_space<vmem>>, vector<1x16x1xf32>
      %76 = vector.shape_cast %75 : vector<1x16x1xf32> to vector<16x1xf32>
      %cst_43 = arith.constant dense<0xFF800000> : vector<16xf32>
      %77 = vector.multi_reduction <maximumf>, %72, %cst_43 [1] : vector<16x16xf32> to vector<16xf32>
      %78 = vector.shape_cast %77 : vector<16xf32> to vector<16x1xf32>
      %79 = arith.maximumf %74, %78 : vector<16x1xf32>
      %80 = vector.broadcast %79 : vector<16x1xf32> to vector<16x16xf32>
      %81 = arith.subf %72, %80 : vector<16x16xf32>
      %82 = math.exp %81 : vector<16x16xf32>
      %83 = arith.subf %74, %79 : vector<16x1xf32>
      %84 = math.exp %83 : vector<16x1xf32>
      %85 = arith.mulf %84, %76 : vector<16x1xf32>
      %cst_44 = arith.constant dense<0.000000e+00> : vector<16xf32>
      %86 = vector.multi_reduction <add>, %82, %cst_44 [1] : vector<16x16xf32> to vector<16xf32>
      %87 = vector.shape_cast %86 : vector<16xf32> to vector<16x1xf32>
      %88 = arith.addf %85, %87 : vector<16x1xf32>
      %c1_45 = arith.constant 1 : index
      %c0_46 = arith.constant 0 : index
      %c0_47 = arith.constant 0 : index
      %89 = vector.load %arg8[%c1_45, %c0_46, %c0_47] : memref<4x16x1xf32, #tpu.memory_space<vmem>>, vector<1x16x1xf32>
      %90 = vector.shape_cast %89 : vector<1x16x1xf32> to vector<16x1xf32>
      %91 = vector.shape_cast %79 : vector<16x1xf32> to vector<1x16x1xf32>
      tpu.vector_store %arg8[%c1_45, %c0_46, %c0_47], %91 {strides = array<i32>} : memref<4x16x1xf32, #tpu.memory_space<vmem>>, vector<1x16x1xf32>,
      %c1_48 = arith.constant 1 : index
      %c0_49 = arith.constant 0 : index
      %c0_50 = arith.constant 0 : index
      %92 = vector.load %arg9[%c1_48, %c0_49, %c0_50] : memref<4x16x1xf32, #tpu.memory_space<vmem>>, vector<1x16x1xf32>
      %93 = vector.shape_cast %92 : vector<1x16x1xf32> to vector<16x1xf32>
      %94 = vector.shape_cast %88 : vector<16x1xf32> to vector<1x16x1xf32>
      tpu.vector_store %arg9[%c1_48, %c0_49, %c0_50], %94 {strides = array<i32>} : memref<4x16x1xf32, #tpu.memory_space<vmem>>, vector<1x16x1xf32>,
      %cst_51 = arith.constant dense<0.000000e+00> : vector<16x32xf32>
      %95 = tpu.matmul %82, %67, %cst_51 {dimension_numbers = #tpu.dot_dimension_numbers<[1], [0], [0], [1], [0, 0, 1, 1], [], []>, precision = #tpu.contract_precision<fp32>} : vector<16x16xf32>, vector<16x32xf32>, vector<16x32xf32> -> vector<16x32xf32>
      %c0_52 = arith.constant 0 : index
      %c32 = arith.constant 32 : index
      %96 = vector.load %arg7[%c0_52, %c32] : memref<16x128xf32, #tpu.memory_space<vmem>>, vector<16x32xf32>
      %97 = vector.broadcast %84 : vector<16x1xf32> to vector<16x32xf32>
      %98 = arith.mulf %97, %96 : vector<16x32xf32>
      %99 = arith.addf %98, %95 : vector<16x32xf32>
      %c0_53 = arith.constant 0 : index
      %c32_54 = arith.constant 32 : index
      %100 = vector.load %arg7[%c0_53, %c32_54] : memref<16x128xf32, #tpu.memory_space<vmem>>, vector<16x32xf32>
      tpu.vector_store %arg7[%c0_53, %c32_54], %99 {strides = array<i32>} : memref<16x128xf32, #tpu.memory_space<vmem>>, vector<16x32xf32>,
      %101 = vector.extract_strided_slice %14 {offsets = [0, 64], sizes = [16, 32], strides = [1, 1]} : vector<16x128xf32> to vector<16x32xf32>
      %102 = vector.extract_strided_slice %16 {offsets = [0, 64], sizes = [16, 32], strides = [1, 1]} : vector<16x128xf32> to vector<16x32xf32>
      %103 = vector.extract_strided_slice %18 {offsets = [0, 64], sizes = [16, 32], strides = [1, 1]} : vector<16x128xf32> to vector<16x32xf32>
      %cst_55 = arith.constant dense<0.000000e+00> : vector<16x16xf32>
      %104 = tpu.matmul %101, %102, %cst_55 {dimension_numbers = #tpu.dot_dimension_numbers<[1], [1], [0], [0], [0, 0, 1, 0], [], []>, precision = #tpu.contract_precision<fp32>} : vector<16x32xf32>, vector<16x32xf32>, vector<16x16xf32> -> vector<16x16xf32>
      %cst_56 = arith.constant 0.176776692 : f32
      %105 = vector.broadcast %cst_56 : f32 to vector<16x16xf32>
      %106 = arith.mulf %104, %105 : vector<16x16xf32>
      %cst_57 = arith.constant -1.000000e+30 : f32
      %107 = vector.broadcast %cst_57 : f32 to vector<16x16xf32>
      %108 = arith.select %28, %107, %106 : vector<16x16xi1>, vector<16x16xf32>
      %c2 = arith.constant 2 : index
      %c0_58 = arith.constant 0 : index
      %c0_59 = arith.constant 0 : index
      %109 = vector.load %arg8[%c2, %c0_58, %c0_59] : memref<4x16x1xf32, #tpu.memory_space<vmem>>, vector<1x16x1xf32>
      %110 = vector.shape_cast %109 : vector<1x16x1xf32> to vector<16x1xf32>
      %c2_60 = arith.constant 2 : index
      %c0_61 = arith.constant 0 : index
      %c0_62 = arith.constant 0 : index
      %111 = vector.load %arg9[%c2_60, %c0_61, %c0_62] : memref<4x16x1xf32, #tpu.memory_space<vmem>>, vector<1x16x1xf32>
      %112 = vector.shape_cast %111 : vector<1x16x1xf32> to vector<16x1xf32>
      %cst_63 = arith.constant dense<0xFF800000> : vector<16xf32>
      %113 = vector.multi_reduction <maximumf>, %108, %cst_63 [1] : vector<16x16xf32> to vector<16xf32>
      %114 = vector.shape_cast %113 : vector<16xf32> to vector<16x1xf32>
      %115 = arith.maximumf %110, %114 : vector<16x1xf32>
      %116 = vector.broadcast %115 : vector<16x1xf32> to vector<16x16xf32>
      %117 = arith.subf %108, %116 : vector<16x16xf32>
      %118 = math.exp %117 : vector<16x16xf32>
      %119 = arith.subf %110, %115 : vector<16x1xf32>
      %120 = math.exp %119 : vector<16x1xf32>
      %121 = arith.mulf %120, %112 : vector<16x1xf32>
      %cst_64 = arith.constant dense<0.000000e+00> : vector<16xf32>
      %122 = vector.multi_reduction <add>, %118, %cst_64 [1] : vector<16x16xf32> to vector<16xf32>
      %123 = vector.shape_cast %122 : vector<16xf32> to vector<16x1xf32>
      %124 = arith.addf %121, %123 : vector<16x1xf32>
      %c2_65 = arith.constant 2 : index
      %c0_66 = arith.constant 0 : index
      %c0_67 = arith.constant 0 : index
      %125 = vector.load %arg8[%c2_65, %c0_66, %c0_67] : memref<4x16x1xf32, #tpu.memory_space<vmem>>, vector<1x16x1xf32>
      %126 = vector.shape_cast %125 : vector<1x16x1xf32> to vector<16x1xf32>
      %127 = vector.shape_cast %115 : vector<16x1xf32> to vector<1x16x1xf32>
      tpu.vector_store %arg8[%c2_65, %c0_66, %c0_67], %127 {strides = array<i32>} : memref<4x16x1xf32, #tpu.memory_space<vmem>>, vector<1x16x1xf32>,
      %c2_68 = arith.constant 2 : index
      %c0_69 = arith.constant 0 : index
      %c0_70 = arith.constant 0 : index
      %128 = vector.load %arg9[%c2_68, %c0_69, %c0_70] : memref<4x16x1xf32, #tpu.memory_space<vmem>>, vector<1x16x1xf32>
      %129 = vector.shape_cast %128 : vector<1x16x1xf32> to vector<16x1xf32>
      %130 = vector.shape_cast %124 : vector<16x1xf32> to vector<1x16x1xf32>
      tpu.vector_store %arg9[%c2_68, %c0_69, %c0_70], %130 {strides = array<i32>} : memref<4x16x1xf32, #tpu.memory_space<vmem>>, vector<1x16x1xf32>,
      %cst_71 = arith.constant dense<0.000000e+00> : vector<16x32xf32>
      %131 = tpu.matmul %118, %103, %cst_71 {dimension_numbers = #tpu.dot_dimension_numbers<[1], [0], [0], [1], [0, 0, 1, 1], [], []>, precision = #tpu.contract_precision<fp32>} : vector<16x16xf32>, vector<16x32xf32>, vector<16x32xf32> -> vector<16x32xf32>
      %c0_72 = arith.constant 0 : index
      %c64 = arith.constant 64 : index
      %132 = vector.load %arg7[%c0_72, %c64] : memref<16x128xf32, #tpu.memory_space<vmem>>, vector<16x32xf32>
      %133 = vector.broadcast %120 : vector<16x1xf32> to vector<16x32xf32>
      %134 = arith.mulf %133, %132 : vector<16x32xf32>
      %135 = arith.addf %134, %131 : vector<16x32xf32>
      %c0_73 = arith.constant 0 : index
      %c64_74 = arith.constant 64 : index
      %136 = vector.load %arg7[%c0_73, %c64_74] : memref<16x128xf32, #tpu.memory_space<vmem>>, vector<16x32xf32>
      tpu.vector_store %arg7[%c0_73, %c64_74], %135 {strides = array<i32>} : memref<16x128xf32, #tpu.memory_space<vmem>>, vector<16x32xf32>,
      %137 = vector.extract_strided_slice %14 {offsets = [0, 96], sizes = [16, 32], strides = [1, 1]} : vector<16x128xf32> to vector<16x32xf32>
      %138 = vector.extract_strided_slice %16 {offsets = [0, 96], sizes = [16, 32], strides = [1, 1]} : vector<16x128xf32> to vector<16x32xf32>
      %139 = vector.extract_strided_slice %18 {offsets = [0, 96], sizes = [16, 32], strides = [1, 1]} : vector<16x128xf32> to vector<16x32xf32>
      %cst_75 = arith.constant dense<0.000000e+00> : vector<16x16xf32>
      %140 = tpu.matmul %137, %138, %cst_75 {dimension_numbers = #tpu.dot_dimension_numbers<[1], [1], [0], [0], [0, 0, 1, 0], [], []>, precision = #tpu.contract_precision<fp32>} : vector<16x32xf32>, vector<16x32xf32>, vector<16x16xf32> -> vector<16x16xf32>
      %cst_76 = arith.constant 0.176776692 : f32
      %141 = vector.broadcast %cst_76 : f32 to vector<16x16xf32>
      %142 = arith.mulf %140, %141 : vector<16x16xf32>
      %cst_77 = arith.constant -1.000000e+30 : f32
      %143 = vector.broadcast %cst_77 : f32 to vector<16x16xf32>
      %144 = arith.select %28, %143, %142 : vector<16x16xi1>, vector<16x16xf32>
      %c3 = arith.constant 3 : index
      %c0_78 = arith.constant 0 : index
      %c0_79 = arith.constant 0 : index
      %145 = vector.load %arg8[%c3, %c0_78, %c0_79] : memref<4x16x1xf32, #tpu.memory_space<vmem>>, vector<1x16x1xf32>
      %146 = vector.shape_cast %145 : vector<1x16x1xf32> to vector<16x1xf32>
      %c3_80 = arith.constant 3 : index
      %c0_81 = arith.constant 0 : index
      %c0_82 = arith.constant 0 : index
      %147 = vector.load %arg9[%c3_80, %c0_81, %c0_82] : memref<4x16x1xf32, #tpu.memory_space<vmem>>, vector<1x16x1xf32>
      %148 = vector.shape_cast %147 : vector<1x16x1xf32> to vector<16x1xf32>
      %cst_83 = arith.constant dense<0xFF800000> : vector<16xf32>
      %149 = vector.multi_reduction <maximumf>, %144, %cst_83 [1] : vector<16x16xf32> to vector<16xf32>
      %150 = vector.shape_cast %149 : vector<16xf32> to vector<16x1xf32>
      %151 = arith.maximumf %146, %150 : vector<16x1xf32>
      %152 = vector.broadcast %151 : vector<16x1xf32> to vector<16x16xf32>
      %153 = arith.subf %144, %152 : vector<16x16xf32>
      %154 = math.exp %153 : vector<16x16xf32>
      %155 = arith.subf %146, %151 : vector<16x1xf32>
      %156 = math.exp %155 : vector<16x1xf32>
      %157 = arith.mulf %156, %148 : vector<16x1xf32>
      %cst_84 = arith.constant dense<0.000000e+00> : vector<16xf32>
      %158 = vector.multi_reduction <add>, %154, %cst_84 [1] : vector<16x16xf32> to vector<16xf32>
      %159 = vector.shape_cast %158 : vector<16xf32> to vector<16x1xf32>
      %160 = arith.addf %157, %159 : vector<16x1xf32>
      %c3_85 = arith.constant 3 : index
      %c0_86 = arith.constant 0 : index
      %c0_87 = arith.constant 0 : index
      %161 = vector.load %arg8[%c3_85, %c0_86, %c0_87] : memref<4x16x1xf32, #tpu.memory_space<vmem>>, vector<1x16x1xf32>
      %162 = vector.shape_cast %161 : vector<1x16x1xf32> to vector<16x1xf32>
      %163 = vector.shape_cast %151 : vector<16x1xf32> to vector<1x16x1xf32>
      tpu.vector_store %arg8[%c3_85, %c0_86, %c0_87], %163 {strides = array<i32>} : memref<4x16x1xf32, #tpu.memory_space<vmem>>, vector<1x16x1xf32>,
      %c3_88 = arith.constant 3 : index
      %c0_89 = arith.constant 0 : index
      %c0_90 = arith.constant 0 : index
      %164 = vector.load %arg9[%c3_88, %c0_89, %c0_90] : memref<4x16x1xf32, #tpu.memory_space<vmem>>, vector<1x16x1xf32>
      %165 = vector.shape_cast %164 : vector<1x16x1xf32> to vector<16x1xf32>
      %166 = vector.shape_cast %160 : vector<16x1xf32> to vector<1x16x1xf32>
      tpu.vector_store %arg9[%c3_88, %c0_89, %c0_90], %166 {strides = array<i32>} : memref<4x16x1xf32, #tpu.memory_space<vmem>>, vector<1x16x1xf32>,
      %cst_91 = arith.constant dense<0.000000e+00> : vector<16x32xf32>
      %167 = tpu.matmul %154, %139, %cst_91 {dimension_numbers = #tpu.dot_dimension_numbers<[1], [0], [0], [1], [0, 0, 1, 1], [], []>, precision = #tpu.contract_precision<fp32>} : vector<16x16xf32>, vector<16x32xf32>, vector<16x32xf32> -> vector<16x32xf32>
      %c0_92 = arith.constant 0 : index
      %c96 = arith.constant 96 : index
      %168 = vector.load %arg7[%c0_92, %c96] : memref<16x128xf32, #tpu.memory_space<vmem>>, vector<16x32xf32>
      %169 = vector.broadcast %156 : vector<16x1xf32> to vector<16x32xf32>
      %170 = arith.mulf %169, %168 : vector<16x32xf32>
      %171 = arith.addf %170, %167 : vector<16x32xf32>
      %c0_93 = arith.constant 0 : index
      %c96_94 = arith.constant 96 : index
      %172 = vector.load %arg7[%c0_93, %c96_94] : memref<16x128xf32, #tpu.memory_space<vmem>>, vector<16x32xf32>
      tpu.vector_store %arg7[%c0_93, %c96_94], %171 {strides = array<i32>} : memref<16x128xf32, #tpu.memory_space<vmem>>, vector<16x32xf32>,
    } else {
    }
    %c0_i32_4 = arith.constant 0 : i32
    %10 = arith.cmpi eq, %arg2, %c0_i32_4 : i32
    %11 = arith.extui %10 : i1 to i32
    %c0_i32_5 = arith.constant 0 : i32
    %12 = arith.cmpi ne, %11, %c0_i32_5 : i32
    scf.if %12 {
      %c0 = arith.constant 0 : index
      %c0_6 = arith.constant 0 : index
      %13 = vector.load %arg7[%c0, %c0_6] : memref<16x128xf32, #tpu.memory_space<vmem>>, vector<16x32xf32>
      %c0_7 = arith.constant 0 : index
      %c0_8 = arith.constant 0 : index
      %c0_9 = arith.constant 0 : index
      %14 = vector.load %arg9[%c0_7, %c0_8, %c0_9] : memref<4x16x1xf32, #tpu.memory_space<vmem>>, vector<1x16x1xf32>
      %15 = vector.shape_cast %14 : vector<1x16x1xf32> to vector<16x1xf32>
      %16 = vector.broadcast %15 : vector<16x1xf32> to vector<16x32xf32>
      %17 = arith.divf %13, %16 : vector<16x32xf32>
      %c0_10 = arith.constant 0 : index
      %c0_11 = arith.constant 0 : index
      %18 = vector.load %arg7[%c0_10, %c0_11] : memref<16x128xf32, #tpu.memory_space<vmem>>, vector<16x32xf32>
      tpu.vector_store %arg7[%c0_10, %c0_11], %17 {strides = array<i32>} : memref<16x128xf32, #tpu.memory_space<vmem>>, vector<16x32xf32>,
      %c0_12 = arith.constant 0 : index
      %c32 = arith.constant 32 : index
      %19 = vector.load %arg7[%c0_12, %c32] : memref<16x128xf32, #tpu.memory_space<vmem>>, vector<16x32xf32>
      %c1 = arith.constant 1 : index
      %c0_13 = arith.constant 0 : index
      %c0_14 = arith.constant 0 : index
      %20 = vector.load %arg9[%c1, %c0_13, %c0_14] : memref<4x16x1xf32, #tpu.memory_space<vmem>>, vector<1x16x1xf32>
      %21 = vector.shape_cast %20 : vector<1x16x1xf32> to vector<16x1xf32>
      %22 = vector.broadcast %21 : vector<16x1xf32> to vector<16x32xf32>
      %23 = arith.divf %19, %22 : vector<16x32xf32>
      %c0_15 = arith.constant 0 : index
      %c32_16 = arith.constant 32 : index
      %24 = vector.load %arg7[%c0_15, %c32_16] : memref<16x128xf32, #tpu.memory_space<vmem>>, vector<16x32xf32>
      tpu.vector_store %arg7[%c0_15, %c32_16], %23 {strides = array<i32>} : memref<16x128xf32, #tpu.memory_space<vmem>>, vector<16x32xf32>,
      %c0_17 = arith.constant 0 : index
      %c64 = arith.constant 64 : index
      %25 = vector.load %arg7[%c0_17, %c64] : memref<16x128xf32, #tpu.memory_space<vmem>>, vector<16x32xf32>
      %c2 = arith.constant 2 : index
      %c0_18 = arith.constant 0 : index
      %c0_19 = arith.constant 0 : index
      %26 = vector.load %arg9[%c2, %c0_18, %c0_19] : memref<4x16x1xf32, #tpu.memory_space<vmem>>, vector<1x16x1xf32>
      %27 = vector.shape_cast %26 : vector<1x16x1xf32> to vector<16x1xf32>
      %28 = vector.broadcast %27 : vector<16x1xf32> to vector<16x32xf32>
      %29 = arith.divf %25, %28 : vector<16x32xf32>
      %c0_20 = arith.constant 0 : index
      %c64_21 = arith.constant 64 : index
      %30 = vector.load %arg7[%c0_20, %c64_21] : memref<16x128xf32, #tpu.memory_space<vmem>>, vector<16x32xf32>
      tpu.vector_store %arg7[%c0_20, %c64_21], %29 {strides = array<i32>} : memref<16x128xf32, #tpu.memory_space<vmem>>, vector<16x32xf32>,
      %c0_22 = arith.constant 0 : index
      %c96 = arith.constant 96 : index
      %31 = vector.load %arg7[%c0_22, %c96] : memref<16x128xf32, #tpu.memory_space<vmem>>, vector<16x32xf32>
      %c3 = arith.constant 3 : index
      %c0_23 = arith.constant 0 : index
      %c0_24 = arith.constant 0 : index
      %32 = vector.load %arg9[%c3, %c0_23, %c0_24] : memref<4x16x1xf32, #tpu.memory_space<vmem>>, vector<1x16x1xf32>
      %33 = vector.shape_cast %32 : vector<1x16x1xf32> to vector<16x1xf32>
      %34 = vector.broadcast %33 : vector<16x1xf32> to vector<16x32xf32>
      %35 = arith.divf %31, %34 : vector<16x32xf32>
      %c0_25 = arith.constant 0 : index
      %c96_26 = arith.constant 96 : index
      %36 = vector.load %arg7[%c0_25, %c96_26] : memref<16x128xf32, #tpu.memory_space<vmem>>, vector<16x32xf32>
      tpu.vector_store %arg7[%c0_25, %c96_26], %35 {strides = array<i32>} : memref<16x128xf32, #tpu.memory_space<vmem>>, vector<16x32xf32>,
      %c0_27 = arith.constant 0 : index
      %c0_28 = arith.constant 0 : index
      %37 = vector.load %arg7[%c0_27, %c0_28] : memref<16x128xf32, #tpu.memory_space<vmem>>, vector<16x128xf32>
      %c0_29 = arith.constant 0 : index
      %c0_30 = arith.constant 0 : index
      %c0_31 = arith.constant 0 : index
      %38 = vector.load %arg6[%c0_29, %c0_30, %c0_31] : memref<1x16x128xf32, #tpu.memory_space<vmem>>, vector<1x16x128xf32>
      %39 = vector.shape_cast %38 : vector<1x16x128xf32> to vector<16x128xf32>
      %40 = vector.shape_cast %37 : vector<16x128xf32> to vector<1x16x128xf32>
      tpu.vector_store %arg6[%c0_29, %c0_30, %c0_31], %40 {strides = array<i32>} : memref<1x16x128xf32, #tpu.memory_space<vmem>>, vector<1x16x128xf32>,
    } else {
    }
    return
  }
  func.func @transform_0(%arg0: i32, %arg1: i32, %arg2: i32) -> (i32, i32, i32) {
    %c0_i32 = arith.constant 0 : i32
    %c0_i32_0 = arith.constant 0 : i32
    return %arg0, %arg1, %c0_i32 : i32, i32, i32
  }
  func.func @transform_1(%arg0: i32, %arg1: i32, %arg2: i32) -> (i32, i32, i32) {
    %c0_i32 = arith.constant 0 : i32
    %c0_i32_0 = arith.constant 0 : i32
    return %arg0, %arg2, %c0_i32 : i32, i32, i32
  }
  func.func @transform_2(%arg0: i32, %arg1: i32, %arg2: i32) -> (i32, i32, i32) {
    %c0_i32 = arith.constant 0 : i32
    %c0_i32_0 = arith.constant 0 : i32
    return %arg0, %arg2, %c0_i32 : i32, i32, i32
  }
  func.func @transform_3(%arg0: i32, %arg1: i32, %arg2: i32) -> (i32, i32, i32) {
    %c0_i32 = arith.constant 0 : i32
    %c0_i32_0 = arith.constant 0 : i32
    return %arg0, %arg1, %c0_i32 : i32, i32, i32
  }
}

</mosaic_0001>

<bundles_post_ra>
// kernel: tpu_custom_call.1
= control target key start
LH: loop header
LB: loop body
LE: loop exit
PB: predicated region body
PF: predicated region fallthrough
CT: control target
= control target key end

     0   :  { %s6741_s0 = inlined_call_operand.hbm [shape: f32[2,16,128], index: 0, kind: input, shape index: {}]   ;;  %s6742_s1 = inlined_call_operand.hbm [shape: f32[2,16,128], index: 1, kind: input, shape index: {}]   ;;  %s6743_s2 = inlined_call_operand.hbm [shape: f32[2,16,128], index: 2, kind: input, shape index: {}]   ;;  %s6744_s3 = inlined_call_operand.hbm [shape: f32[2,16,128], index: 3, kind: output, shape index: {}]  }
   0x1   :  { %6750 = sst [smem:[#allocation18_spill]] %s6742_s1 }
   0x2   :  { %8 = vsyncpa [#allocation6], 0 }
   0x3   :  { %10 = vsyncpa [#allocation6 + $0x1], 0 }
   0x4   :  { %11 = vsyncpa [#allocation9], 0 }
   0x5   :  { %13 = vsyncpa [#allocation9 + $0x1], 0 }
   0x6   :  { %14 = vsyncpa [#allocation7], 0 }
   0x7   :  { %16 = vsyncpa [#allocation7 + $0x1], 0  ;;  %s5937_s12 = smov 0   ;;  %s5939_s13 = smov 0  }
   0x8   :  { %s5941_s14 = smov 0   ;;  %s5943_s15 = smov 0  }
   0x9   :  { %s5945_s16 = smov 0   ;;  %s5947_s17 = smov 0  }
   0xa LB: > { %6751 = sst [smem:[#allocation15_spill]] %s5897_s16  ;;  %s5968_s18 = sadd.s32 4294967295, %s5901_s17   ;;  %s5901_s17 = sphi %s5947_s17, %s22_s17   ;;  %s5897_s16 = sphi %s5945_s16, %s6770_s16   ;;  %s5893_s15 = sphi %s5943_s15, %s6769_s15   ;;  %s5889_s14 = sphi %s5941_s14, %s6773_s14   ;;  %s5885_s13 = sphi %s5939_s13, %s6772_s13   ;;  %s5881_s12 = sphi %s5937_s12, %s6771_s12  }
   0xb   : > { %s5040_s19 = sadd.s32 4294967294, %s5901_s17   ;;  %s41_s20 = sadd.s32 1, %s5897_s16 }
   0xc   : > { %s50_s21 = sadd.s32 1, %s5889_s14  ;;  %p43_p0 = scmp.ge.s32.totalorder %s41_s20, 2 }
   0xd   : > { %p57_p1 = scmp.ne.s32.totalorder %s5889_s14, %s5885_s13  ;;  %p58_p2 = scmp.eq.s32.totalorder %s5901_s17, 0 }
   0xe   : > { %p63_p3 = scmp.ne.s32.totalorder %s5885_s13, %s5881_s12  ;;  %s6775_s20 = smov (%p43_p0, %s41_s20), 0 }
   0xf   : > { %6752 = sst [smem:[#allocation16_spill]] %s6775_s20  ;;  %p5980_p4 = por %p58_p2, %p57_p1 }
  0x10   : > { %p64_p5 = scmp.eq.s32.totalorder %s5968_s18, 0  ;;  %s45_s23 = ssub.s32 %s5897_s16, %s6775_s20 }
  0x11   : > { %p145_p6 = scmp.eq.s32.totalorder %s5968_s18, 1  ;;  %p48_p7 = scmp.eq.s32.totalorder %s45_s23, 0 }
  0x12   : > { %p5988_p8 = por %p64_p5, %p63_p3  ;;  %p151_p10 = scmp.eq.s32.totalorder %s5040_s19, 1 }
  0x13   : > { %p5992_p9 = por %p145_p6, %p57_p1  ;;  %p5616_p13 = scmp.lt.s32.totalorder %s5901_s17, 2 }
  0x14   : > { %s5997_s26 = scalar_select %p48_p7, %s5889_s14, %s50_s21  }
  0x15   : > { %p5999_p11 = por %p151_p10, %p63_p3  ;;  %s6745_s28 = sand.u32 1, %s5889_s14  }
  0x16   : > { %6756 = sst [smem:[#allocation17_spill]] %s5997_s26  ;;  %s6008_s29 = sshll.u32 %s6745_s28, 4 }
  0x17   : > { %s6011_s30 = sshll.u32 %s5897_s16, 8  ;;  %p6015_p0 = pnand %p5616_p13, %p5980_p4 }
  0x18   : > { %s194_s5 = sand.u32 1, %s5901_s17   ;;  %s6759_s1 = sld [smem:[#allocation18_spill]] }
  0x19   : > { %s198_s9 = scalar_lea.vmem [#allocation8], %s6008_s29  ;;  %p5052_p1 = scmp.ge.s32.totalorder %s5901_s17, 1 }
  0x1a   : > { %s207_s10 = sshll.u32 %s198_s9, 4  ;;  %p238_p2 = scmp.lt.s32.totalorder %s5901_s17, 3  ;;  %s208_s10 = int_to_ptr.vmem [resolvable:$true] %s207_s10 }
  0x1b   : > { %s6027_s11 = scalar_lea.sflag [#allocation9], %s194_s5  ;;  %p5735_p3 = pneg %p6015_p0 }
  0x1c   : > { %s5746_s19 = scalar_lea.vmem %s208_s10, 256  ;;  %s5903_s21 = smov [#allocation8]  }
  0x1d   : > { %p5747_p4 = scmp.ne.s32.totalorder %s208_s10, %s5746_s19  ;;  %s5751_s22 = sshll.u32 %s5903_s21, 4  ;;  %s5752_s22 = int_to_ptr.vmem [resolvable:$false] %s5751_s22 }
  0x1e   : > { %s206_s8 = scalar_lea.hbm %s6759_s1, %s6011_s30  ;;  %s5753_s23 = scalar_lea.vmem %s5752_s22, 512 }
  0x1f   : > { %p5749_p5 = pnand %p5747_p4, %p5735_p3  ;;  %p5754_p7 = scmp.lt.s32.totalorder %s208_s10, %s5752_s22 }
  0x20   : > { %p5755_p10 = scmp.lt.s32.totalorder %s5753_s23, %s5746_s19 }
  0x21   : > { %p5750_p6 = pneg %p5749_p5 }
  0x22   : > { %p5756_p13 = por %p5755_p10, %p5754_p7 }
  0x24   : > { %p5757_p12 = pnand %p5756_p13, %p5750_p6 }
  0x26   : > { %5760 = shalt.err (!%p5757_p12)
}
  0x27   : > { %s6748_s6 = smov 128   ;;  %s5905_s5 = smov 8  }
  0x28   : > { %5608 = dma.hbm_to_vmem [thread:$0]  (!%p6015_p0), %s206_s8, 256, %s208_s10, %s6027_s11, %s6748_s6, %s6748_s6, %s5905_s5  }
  0x29   : > { %p6044_p4 = pnand %p5052_p1, %p238_p2  ;;  %s183_s21 = scalar_lea.hbm %s6741_s0, %s6011_s30 }
  0x2a   : > { %s175_s22 = scalar_lea.vmem [#allocation5], %s6008_s29  ;;  %s229_s20 = scalar_lea.hbm %s6743_s2, %s6011_s30 }
  0x2b   : > { %s184_s23 = sshll.u32 %s175_s22, 4  ;;  %s6761_s16 = sand.u32 1, %s5889_s14   ;;  %s185_s23 = int_to_ptr.vmem [resolvable:$true] %s184_s23 }
  0x2c   : > { %s172_s26 = scalar_lea.sflag [#allocation6], %s6761_s16  ;;  %s5774_s8 = scalar_lea.vmem %s185_s23, 256 }
  0x2d   : > { %p5775_p12 = scmp.ne.s32.totalorder %s185_s23, %s5774_s8  ;;  %s5906_s10 = smov [#allocation5]  }
  0x2e   : > { %s5779_s6 = sshll.u32 %s5906_s10, 4  ;;  %s5780_s6 = int_to_ptr.vmem [resolvable:$false] %s5779_s6 }
  0x2f   : > { %p5777_p1 = pnand %p5775_p12, %p5735_p3  ;;  %s5781_s9 = scalar_lea.vmem %s5780_s6, 512 }
  0x30   : > { %p5782_p5 = scmp.lt.s32.totalorder %s185_s23, %s5780_s6  ;;  %p5783_p6 = scmp.lt.s32.totalorder %s5781_s9, %s5774_s8 }
  0x31   : > { %p5778_p2 = pneg %p5777_p1 }
  0x32   : > { %p5784_p7 = por %p5783_p6, %p5782_p5 }
  0x34   : > { %p5785_p10 = pnand %p5784_p7, %p5778_p2 }
  0x36   : > { %5788 = shalt.err (!%p5785_p10)
}
  0x37   : > { %s6762_s1 = smov 128   ;;  %s221_s16 = scalar_lea.vmem [#allocation10], %s6008_s29 }
  0x38   : > { %5605 = dma.hbm_to_vmem [thread:$0]  (!%p6015_p0), %s183_s21, 256, %s185_s23, %s172_s26, %s6762_s1, %s6762_s1, %s5905_s5  }
  0x39   : > { %s230_s28 = sshll.u32 %s221_s16, 4  ;;  %s5907_s6 = smov [#allocation10]   ;;  %s231_s28 = int_to_ptr.vmem [resolvable:$true] %s230_s28 }
  0x3a   : > { %s5802_s19 = scalar_lea.vmem %s231_s28, 256  ;;  %s5807_s22 = sshll.u32 %s5907_s6, 4  ;;  %s5808_s22 = int_to_ptr.vmem [resolvable:$false] %s5807_s22 }
  0x3b   : > { %p5803_p13 = scmp.ne.s32.totalorder %s231_s28, %s5802_s19  ;;  %s5809_s8 = scalar_lea.vmem %s5808_s22, 512 }
  0x3c   : > { %p5810_p2 = scmp.lt.s32.totalorder %s231_s28, %s5808_s22  ;;  %p5811_p5 = scmp.lt.s32.totalorder %s5809_s8, %s5802_s19 }
  0x3d   : > { %p5805_p12 = pnand %p5803_p13, %p5735_p3 }
  0x3e   : > { %p5812_p6 = por %p5811_p5, %p5810_p2 }
  0x3f   : > { %p5806_p1 = pneg %p5805_p12 }
  0x41   : > { %p5813_p7 = pnand %p5812_p6, %p5806_p1 }
  0x43   : > { %5816 = shalt.err (!%p5813_p7)
}
  0x44   : > { %5611 = dma.hbm_to_vmem [thread:$0]  (!%p6015_p0), %s229_s20, 256, %s231_s28, %s6027_s11, %s6762_s1, %s6762_s1, %s5905_s5  }
  0x45   : > { %242 = sbr.rel (%p6044_p4) target bundleno = 2599 (0xa27), region = 32  ;;  %s6085_s21 = sand.u32 (!%p6044_p4), 1, %s5885_s13  }
  0x46   : > { %s6088_s4 = sshll.u32 (!%p6044_p4), %s6085_s21, 4  ;;  %s245_s23 = scalar_lea.sflag (!%p6044_p4), [#allocation6], %s6085_s21 }
  0x47   : > { %s6092_s10 = scalar_lea.vmem (!%p6044_p4), [#allocation5], %s6088_s4 }
  0x4a   : > { %5868 = dma.done.wait (%p5988_p8), %s245_s23, 256  }
  0x4b   : > { %5870 = vsyncadd (%p5988_p8), %s245_s23, 4294967040  ;;  %s253_s20 = sand.u32 1, %s5968_s18   ;;  %s6100_s11 = scalar_lea.vmem [#allocation8], %s6088_s4 }
  0x4c   : > { %s254_s30 = scalar_lea.sflag [#allocation9], %s253_s20 }
  0x4d   : > { %5872 = dma.done.wait (%p5988_p8), %s254_s30, 512  }
  0x4e   : > { %5874 = vsyncadd (%p5988_p8), %s254_s30, 4294966784  ;;  %vm354_vm0 = vcmask 261120   ;;  %v6107_v0 = vld [vmem:[%s6100_s11 + $0x8] sm:$0xff]  ;;  %v6110_v1 = vld [vmem:[%s6100_s11] sm:$0xff]  ;;  %vm311_vm1 = vcmask 7168   ;;  %v339_v36 = vlaneseq  ;;  %vm877_vm7 = vcmask 130048  }
  0x4f   : > { %v6113_v2 = vld [vmem:[%s6092_s10] sm:$0xff]  ;;  %v365_v3 = vsel %vm354_vm0, %v6107_v0, 0  ;;  %v362_v4 = vsel %vm354_vm0, %v6110_v1, 0  ;;  %v6122_v6 = vld [vmem:[%s6092_s10 + $0x8] sm:$0xff]  ;;  %v5908_v28 = vmov -1e+30  }
  0x50   : > { %v356_v5 = vsel %vm354_vm0, %v6113_v2, 0  ;;  %v396_v7 = vand.u32 4294901760, %v365_v3  ;;  %v399_v8 = vand.u32 4294901760, %v362_v4  ;;  %v359_v10 = vsel %vm354_vm0, %v6122_v6, 0  ;;  %312 = vst.msk [vmem:[#allocation3] sm:$0xff] %vm311_vm1, %v5908_v28  ;;  %313 = vst.msk [vmem:[#allocation3 + $0x8] sm:$0xff] %vm311_vm1, %v5908_v28 }
  0x51   : > { %v434_v9 = vand.u32 4294901760, %v356_v5  ;;  %v444_v11 = vand.u32 4294901760, %v359_v10  ;;  %314 = vst.msk [vmem:[#allocation3 + $0x10] sm:$0xff] %vm311_vm1, %v5908_v28  ;;  %315 = vst.msk [vmem:[#allocation3 + $0x18] sm:$0xff] %vm311_vm1, %v5908_v28  ;;  %v340_v44 = vshrl.u32 %v339_v36, 7  ;;  %v346_v48 = vand.u32 127, %v339_v36 }
  0x52   : > { %5258 = vmatprep.subr.mxu0 %v396_v7  ;;  %v484_v12 = vsub.f32 %v365_v3, %v396_v7  ;;  %v491_v14 = vsub.f32 %v362_v4, %v399_v8  ;;  %316 = vst.msk [vmem:[#allocation3 + $0x20] sm:$0xff] %vm311_vm1, %v5908_v28  ;;  %317 = vst.msk [vmem:[#allocation3 + $0x28] sm:$0xff] %vm311_vm1, %v5908_v28  ;;  %v5909_v63 = vmov 0   ;;  %s5910_s18 = smov 96   ;;  %v5911_v3 = vmov 0.0   ;;  %s6185_s24 = scalar_lea.vmem [#allocation10], %s6088_s4 }
  0x53   : > { %v435_v13 = vsub.f32 %v356_v5, %v434_v9  ;;  %5269 = vmatprep.mubr.f32.mxu1 %v434_v9  ;;  %5259 = vmatpush3.xpose.msra.mxu0 %v396_v7  ;;  %v445_v15 = vsub.f32 %v359_v10, %v444_v11  ;;  %318 = vst.msk [vmem:[#allocation3 + $0x30] sm:$0xff] %vm311_vm1, %v5908_v28  ;;  %319 = vst.msk [vmem:[#allocation3 + $0x38] sm:$0xff] %vm311_vm1, %v5908_v28  ;;  %v341_v49 = vadd.s32 8, %v340_v44  ;;  %s5912_s5 = smov 64   ;;  %s5913_s7 = smov 32   ;;  %vm2561_vm8 = vcmask 523520  }
  0x54   : > { %5260 = vmatprep.subr.mxu0 %v399_v8  ;;  %v485_v16 = vand.u32 4294901760, %v484_v12  ;;  %v492_v18 = vand.u32 4294901760, %v491_v14  ;;  %vm349_vm2 = vcmp.gt.s32.totalorder %v346_v48, %v340_v44  ;;  %vm351_vm3 = vcmp.ge.s32.totalorder %v346_v48, 8  ;;  %5676 = vset.pattern.permute.xlu1 %v5909_v63  ;;  %320 = vst.msk [vmem:[#allocation4] sm:$0xff] %vm311_vm1, %v5911_v3  ;;  %309 = vst [vmem:[#allocation2] sm:$0xff] %v5911_v3  ;;  %s5065_s9 = sshll.u32 %s5893_s15, 8 }
  0x55   : > { %v436_v17 = vand.u32 4294901760, %v435_v13  ;;  %v446_v19 = vand.u32 4294901760, %v445_v15  ;;  %vm350_vm4 = vcmp.gt.s32.totalorder %v346_v48, %v341_v49  ;;  %vm6134_vm5 = vmor %vm349_vm2, %vm351_vm3  ;;  %5677 = vset.pattern.permute.xlu0 %v5909_v63  ;;  %310 = vst [vmem:[#allocation2 + $0x8] sm:$0xff] %v5911_v3  ;;  %vm3674_vm9 = vcmask 785920   ;;  %s298_s1 = scalar_lea.vmem [#allocation11], %s6088_s4  ;;  %s6691_s6 = scalar_lea.hbm %s6744_s3, %s5065_s9 }
  0x56   : > { %v486_v20 = vsub.f32 %v484_v12, %v485_v16  ;;  %v493_v22 = vsub.f32 %v491_v14, %v492_v18  ;;  %vm6138_vm6 = vmor %vm350_vm4, %vm351_vm3  ;;  %321 = vst.msk [vmem:[#allocation4 + $0x8] sm:$0xff] %vm311_vm1, %v5911_v3  ;;  %vm4787_vm10 = vcmask 1048320   ;;  %s4900_s16 = sshll.u32 %s298_s1, 4  ;;  %s4885_s22 = scalar_lea.sflag [#allocation7], %s6085_s21  ;;  %s6693_s16 = int_to_ptr.vmem [resolvable:$true] %s4900_s16 }
  0x57   : > { %v437_v21 = vsub.f32 %v435_v13, %v436_v17  ;;  %5261 = vmatpush3.xpose.msra.mxu0 %v399_v8  ;;  %v447_v23 = vsub.f32 %v445_v15, %v446_v19  ;;  %322 = vst.msk [vmem:[#allocation4 + $0x10] sm:$0xff] %vm311_vm1, %v5911_v3  ;;  %323 = vst.msk [vmem:[#allocation4 + $0x18] sm:$0xff] %vm311_vm1, %v5911_v3  ;;  %v6164_v4 = vld [vmem:[#allocation3] sm:$0xff]  ;;  %s5817_s8 = scalar_lea.vmem %s6693_s16, 256  ;;  %s5914_s15 = smov [#allocation11]  }
  0x58   : > { %v487_v24 = vand.u32 4294901760, %v486_v20  ;;  %5272 = vmatprep.subr.mxu0 %v484_v12  ;;  %v494_v26 = vand.u32 4294901760, %v493_v22  ;;  %324 = vst.msk [vmem:[#allocation4 + $0x20] sm:$0xff] %vm311_vm1, %v5911_v3  ;;  %325 = vst.msk [vmem:[#allocation4 + $0x28] sm:$0xff] %vm311_vm1, %v5911_v3  ;;  %p5818_p8 = scmp.ne.s32.totalorder %s6693_s16, %s5817_s8  ;;  %s5821_s26 = sshll.u32 %s5914_s15, 4  ;;  %s5822_s26 = int_to_ptr.vmem [resolvable:$false] %s5821_s26 }
  0x59   : > { %v438_v25 = vand.u32 4294901760, %v437_v21  ;;  %v448_v27 = vand.u32 4294901760, %v447_v23  ;;  %326 = vst.msk [vmem:[#allocation4 + $0x30] sm:$0xff] %vm311_vm1, %v5911_v3  ;;  %327 = vst.msk [vmem:[#allocation4 + $0x38] sm:$0xff] %vm311_vm1, %v5911_v3  ;;  %s5823_s29 = scalar_lea.vmem %s5822_s26, 512  ;;  %p5824_p4 = scmp.lt.s32.totalorder %s6693_s16, %s5822_s26 }
  0x5a   : > { %5265 = vmatprep.subr.mxu1 %v487_v24  ;;  %p5819_p0 = pnand %p5818_p8, %p5992_p9  ;;  %p5825_p10 = scmp.lt.s32.totalorder %s5823_s29, %s5817_s8 }
  0x5b   : > { %5262 = vmatprep.mubr.f32.mxu0 %v438_v25  ;;  %5266 = vmatpush3.xpose.msra.mxu1 %v487_v24 }
  0x5c   : > { %5263 = vmatmul.mubr.f32.vlgmr.msra.gmra.mxu0 %v448_v27  ;;  %5267 = vmatprep.subr.mxu1 %v494_v26  ;;  %p5820_p3 = pneg %p5819_p0  ;;  %p5826_p13 = por %p5825_p10, %p5824_p4 }
  0x5d   : > { %5273 = vmatpush3.xpose.msra.mxu0 %v484_v12  ;;  %5276 = vmatprep.mubr.f32.mxu0 %v435_v13  ;;  %v6188_v13 = vld [vmem:[%s6185_s24 + $0x8] sm:$0xff] }
  0x5e   : > { %5274 = vmatprep.subr.mxu0 %v491_v14  ;;  %p5827_p12 = pnand %p5826_p13, %p5820_p3 }
  0x5f   : > { %5268 = vmatpush3.xpose.msra.mxu1 %v494_v26 }
  0x60   : > { %5279 = vmatprep.subr.mxu1 %v396_v7 }
  0x61   : > { %5275 = vmatpush3.xpose.msra.mxu0 %v491_v14  ;;  %v6191_v14 = vand.u32 4294901760, %v6188_v13 }
  0x62   : > { %5286 = vmatprep.subr.mxu0 %v485_v16  ;;  %5270 = vmatmul.mubr.f32.vlgmr.msra.gmra.mxu1 %v444_v11 }
  0x63   : > { %5280 = vmatpush3.xpose.msra.mxu1 %v396_v7  ;;  %5283 = vmatprep.mubr.f32.mxu1 %v436_v17 }
  0x64   : > { %5277 = vmatmul.mubr.f32.vlgmr.msra.gmra.mxu0 %v445_v15  ;;  %5281 = vmatprep.subr.mxu1 %v399_v8  ;;  %v6194_v15 = vld [vmem:[%s6185_s24] sm:$0xff] }
  0x65   : > { %5287 = vmatpush3.xpose.msra.mxu0 %v485_v16  ;;  %5290 = vmatprep.mubr.f32.mxu0 %v434_v9  ;;  %v6200_v16 = vsub.f32 %v6188_v13, %v6191_v14  ;;  %v6203_v17 = vand.u32 4294901760, %v6194_v15 }
  0x66   : > { %5288 = vmatprep.subr.mxu0 %v492_v18 }
  0x67   : > { %5282 = vmatpush3.xpose.msra.mxu1 %v399_v8 }
  0x68   : > { %5293 = vmatprep.subr.mxu1 %v396_v7 }
  0x69   : > { %5289 = vmatpush3.xpose.msra.mxu0 %v492_v18  ;;  %v6208_v18 = vand.u32 4294901760, %v6200_v16 }
  0x6a   : > { %5284 = vmatmul.mubr.f32.vlgmr.msra.gmra.mxu1 %v446_v19  ;;  %5300 = vmatprep.subr.mxu0 %v6191_v14  ;;  %v6212_v19 = vsub.f32 %v6194_v15, %v6203_v17 }
  0x6b   : > { %5294 = vmatpush3.xpose.msra.mxu1 %v396_v7  ;;  %5297 = vmatprep.mubr.f32.mxu1 %v434_v9  ;;  %v1048_v20 = vsub.f32 %v6200_v16, %v6208_v18 }
  0x6c   : > { %5291 = vmatmul.mubr.f32.vlgmr.msra.gmra.mxu0 %v444_v11  ;;  %5295 = vmatprep.subr.mxu1 %v399_v8  ;;  %v6221_v21 = vand.u32 4294901760, %v6212_v19 }
  0x6d   : > { %5301 = vmatpush3.msra.mxu0 %v6191_v14  ;;  %v1049_v22 = vand.u32 4294901760, %v1048_v20 }
  0x6e   : > { %5302 = vmatprep.subr.mxu0 %v6203_v17  ;;  %v1055_v23 = vsub.f32 %v6212_v19, %v6221_v21 }
  0x6f   : > { %5296 = vmatpush3.xpose.msra.mxu1 %v399_v8  ;;  %v6169_v8 = vld [vmem:[#allocation3 + $0x8] sm:$0xff]  ;;  %5303 = vmatpush3.msra.mxu0 %v6203_v17 }
  0x70   : > { %5314 = vmatprep.subr.mxu0 %v6200_v16  ;;  %5307 = vmatprep.subr.mxu1 %v1049_v22  ;;  %v1056_v24 = vand.u32 4294901760, %v1055_v23 }
  0x72   : > { %5298 = vmatmul.mubr.f32.vlgmr.msra.gmra.mxu1 %v444_v11 }
  0x73   : > { %5308 = vmatpush3.msra.mxu1 %v1049_v22 }
  0x74   : > { %5309 = vmatprep.subr.mxu1 %v1056_v24 }
  0x75   : > { %5310 = vmatpush3.msra.mxu1 %v1056_v24 }
  0x76   : > { %5321 = vmatprep.subr.mxu1 %v6191_v14 }
 0x11c   : > { %v5264_v29 = vpop.f32.mrf.mxu0 }
 0x11e   : > { %v440_v30 = vpop.f32.mrf.mxu0 }
 0x122   : > { %v5271_v31 = vpop.f32.mrf.mxu1 }
 0x123   : > { %v538_v34 = vadd.f32 %v5271_v31, %v5264_v29 }
 0x124   : > { %v531_v32 = vpop.f32.mrf.mxu1  ;;  %v5278_v33 = vpop.f32.mrf.mxu0 }
 0x125   : > { %v532_v35 = vadd.f32 %v531_v32, %v440_v30  ;;  %v621_v39 = vadd.f32 %v5278_v33, %v538_v34 }
 0x126   : > { %v613_v37 = vpop.f32.mrf.mxu0 }
 0x127   : > { %v614_v42 = vadd.f32 %v613_v37, %v532_v35 }
 0x12a   : > { %v5285_v38 = vpop.f32.mrf.mxu1 }
 0x12b   : > { %v704_v43 = vadd.f32 %v5285_v38, %v621_v39 }
 0x12c   : > { %v695_v40 = vpop.f32.mrf.mxu1  ;;  %v5292_v41 = vpop.f32.mrf.mxu0 }
 0x12d   : > { %v696_v45 = vadd.f32 %v695_v40, %v614_v42  ;;  %v787_v47 = vadd.f32 %v5292_v41, %v704_v43 }
 0x12e   : > { %v780_v46 = vpop.f32.mrf.mxu0 }
 0x12f   : > { %v781_v51 = vadd.f32 %v780_v46, %v696_v45 }
 0x132   : > { %v5299_v50 = vpop.f32.mrf.mxu1 }
 0x133   : > { %v866_v52 = vadd.f32 %v5299_v50, %v787_v47 }
 0x134   : > { %v859_v53 = vpop.f32.mrf.mxu1 }
 0x135   : > { %v860_v54 = vadd.f32 %v859_v53, %v781_v51  ;;  %v870_v56 = vmul.f32 0.17677669, %v866_v52 }
 0x137   : > { %v869_v57 = vmul.f32 0.17677669, %v860_v54  ;;  %v6150_v61 = vsel %vm6138_vm6, -1e+30, %v870_v56 }
 0x138   : > { %v881_v62 = vsel %vm877_vm7, %v6150_v61, -inf }
 0x139   : > { %v6144_v59 = vsel %vm6134_vm5, -1e+30, %v869_v57 }
 0x13a   : > { %v878_v60 = vsel %vm877_vm7, %v6144_v59, -inf }
 0x13b   : > { %879 = vmax.xlane.f32.xlu0 %v878_v60 }
 0x13f   : > { %882 = vmax.xlane.f32.xlu0 %v881_v62 }
 0x155   : > { %1455 = vrot.lane.b32.xlu0 %v6107_v0, %s5910_s18 }
 0x1c4   : > { %v880_v5 = vpop.xlane.xlu0 %879 }
 0x1c5   : > { %v6167_v7 = vmax.f32 %v6164_v4, %v880_v5 }
 0x1c7   : > { %v902_v9 = vsub.f32 %v6164_v4, %v6167_v7  ;;  %919 = vst.msk [vmem:[#allocation3] sm:$0xff] %vm311_vm1, %v6167_v7  ;;  %888 = vperm.xlu1 %5676, %v6167_v7  }
 0x1c8   : > { %v883_v10 = vpop.xlane.xlu0 %882 }
 0x1c9   : > { %v6177_v11 = vmax.f32 %v6169_v8, %v883_v10 }
 0x1cb   : > { %v903_v12 = vsub.f32 %v6169_v8, %v6177_v11  ;;  %920 = vst.msk [vmem:[#allocation3 + $0x8] sm:$0xff] %vm311_vm1, %v6177_v11  ;;  %893 = vperm.xlu1 %5676, %v6177_v11  }
 0x1cc   : > { %v1456_v31 = vpop.permute.xlu0 %1455 }
 0x1cd   : > { %v1463_v32 = vsel %vm354_vm0, %v1456_v31, 0 }
 0x1ce   : > { %v6232_v34 = vand.u32 4294901760, %v1463_v32 }
 0x1cf   : > { %1453 = vrot.lane.b32.xlu1 %v6110_v1, %s5910_s18 }
 0x1d0   : > { %v6240_v38 = vsub.f32 %v1463_v32, %v6232_v34 }
 0x1d2   : > { %v6252_v46 = vand.u32 4294901760, %v6240_v38 }
 0x1d3   : > { %1449 = vrot.lane.b32.xlu1 %v6113_v2, %s5910_s18 }
 0x1d4   : > { %v1584_v54 = vsub.f32 %v6240_v38, %v6252_v46 }
 0x1d6   : > { %v1585_v63 = vand.u32 4294901760, %v1584_v54 }
 0x1d7   : > { %1451 = vrot.lane.b32.xlu1 %v6122_v6, %s5910_s18 }
 0x242   : > { %v889_v25 = vpop.permute.xlu1 %888 }
 0x243   : > { %v896_v26 = vsub.f32 %v6144_v59, %v889_v25 }
 0x245   : > { %v898_v27 = vmul.f32 1.442695, %v896_v26 }
 0x246   : > { %v894_v28 = vpop.permute.xlu1 %893 }
 0x247   : > { %5678 = vpow2.f32 %v898_v27  ;;  %v897_v29 = vsub.f32 %v6150_v61, %v894_v28 }
 0x249   : > { %v900_v30 = vmul.f32 1.442695, %v897_v29 }
 0x24a   : > { %v1454_v33 = vpop.permute.xlu1 %1453 }
 0x24b   : > { %5680 = vpow2.f32 %v900_v30  ;;  %v1461_v35 = vsel %vm354_vm0, %v1454_v33, 0 }
 0x24c   : > { %v6237_v37 = vand.u32 4294901760, %v1461_v35 }
 0x24e   : > { %v1450_v41 = vpop.permute.xlu1 %1449  ;;  %v6247_v43 = vsub.f32 %v1461_v35, %v6237_v37 }
 0x24f   : > { %v1457_v49 = vsel %vm354_vm0, %v1450_v41, 0 }
 0x250   : > { %v6256_v52 = vand.u32 4294901760, %v6247_v43  ;;  %v6259_v53 = vand.u32 4294901760, %v1457_v49 }
 0x252   : > { %v1452_v59 = vpop.permute.xlu1 %1451  ;;  %v1591_v61 = vsub.f32 %v6247_v43, %v6256_v52  ;;  %v1533_v62 = vsub.f32 %v1457_v49, %v6259_v53 }
 0x253   : > { %v1459_v5 = vsel %vm354_vm0, %v1452_v59, 0 }
 0x254   : > { %v6235_v36 = vpop.eup %5678  ;;  %v1592_v10 = vand.u32 4294901760, %v1591_v61  ;;  %v1542_v20 = vand.u32 4294901760, %v1459_v5  ;;  %v1534_v22 = vand.u32 4294901760, %v1533_v62 }
 0x255   : > { %v924_v39 = vsel %vm877_vm7, %v6235_v36, 0 }
 0x256   : > { %v996_v40 = vand.u32 4294901760, %v924_v39 }
 0x258   : > { %v6244_v42 = vpop.eup %5680  ;;  %5311 = vmatprep.mubr.f32.mxu1 %v996_v40  ;;  %v997_v44 = vsub.f32 %v924_v39, %v996_v40 }
 0x259   : > { %v927_v45 = vsel %vm877_vm7, %v6244_v42, 0 }
 0x25a   : > { %v1006_v47 = vand.u32 4294901760, %v927_v45  ;;  %v998_v48 = vand.u32 4294901760, %v997_v44 }
 0x25c   : > { %v1007_v50 = vsub.f32 %v927_v45, %v1006_v47  ;;  %5312 = vmatmul.mubr.f32.vlgmr.msra.gmra.mxu1 %v1006_v47  ;;  %v999_v51 = vsub.f32 %v997_v44, %v998_v48 }
 0x25d   : > { %5322 = vmatpush3.msra.mxu1 %v6191_v14  ;;  %5325 = vmatprep.mubr.f32.mxu1 %v998_v48 }
 0x25e   : > { %5323 = vmatprep.subr.mxu1 %v6203_v17  ;;  %v1000_v56 = vand.u32 4294901760, %v999_v51  ;;  %v1008_v57 = vand.u32 4294901760, %v1007_v50 }
 0x25f   : > { %5324 = vmatpush3.msra.mxu1 %v6203_v17 }
 0x260   : > { %5335 = vmatprep.subr.mxu1 %v6191_v14  ;;  %5304 = vmatprep.mubr.f32.mxu0 %v1000_v56  ;;  %v1009_v60 = vsub.f32 %v1007_v50, %v1008_v57 }
 0x261   : > { %5326 = vmatmul.mubr.f32.vlgmr.msra.gmra.mxu1 %v1008_v57 }
 0x262   : > { %5336 = vmatpush3.msra.mxu1 %v6191_v14  ;;  %5339 = vmatprep.mubr.f32.mxu1 %v996_v40  ;;  %v1010_v3 = vand.u32 4294901760, %v1009_v60  ;;  %v1543_v14 = vsub.f32 %v1459_v5, %v1542_v20 }
 0x263   : > { %5337 = vmatprep.subr.mxu1 %v6203_v17 }
 0x264   : > { %5338 = vmatpush3.msra.mxu1 %v6203_v17  ;;  %5305 = vmatmul.mubr.f32.vlgmr.msra.gmra.mxu0 %v1010_v3  ;;  %v1535_v17 = vsub.f32 %v1533_v62, %v1534_v22 }
 0x265   : > { %5349 = vmatprep.subr.mxu1 %v1585_v63  ;;  %5315 = vmatpush3.msra.mxu0 %v6200_v16  ;;  %v1544_v16 = vand.u32 4294901760, %v1543_v14 }
 0x266   : > { %5340 = vmatmul.mubr.f32.vlgmr.msra.gmra.mxu1 %v1006_v47  ;;  %5316 = vmatprep.subr.mxu0 %v6212_v19 }
 0x267   : > { %5350 = vmatpush3.xpose.msra.mxu1 %v1585_v63  ;;  %5318 = vmatprep.mubr.f32.mxu0 %v997_v44 }
 0x268   : > { %5317 = vmatpush3.msra.mxu0 %v6212_v19  ;;  %5351 = vmatprep.subr.mxu1 %v1592_v10  ;;  %v1536_v19 = vand.u32 4294901760, %v1535_v17 }
 0x269   : > { %5328 = vmatprep.subr.mxu0 %v6208_v18  ;;  %5319 = vmatmul.mubr.f32.vlgmr.msra.gmra.mxu0 %v1007_v50 }
 0x26a   : > { %5329 = vmatpush3.msra.mxu0 %v6208_v18  ;;  %5353 = vmatprep.mubr.f32.mxu1 %v6259_v53  ;;  %v1545_v18 = vsub.f32 %v1543_v14, %v1544_v16 }
 0x26b   : > { %5352 = vmatpush3.xpose.msra.mxu1 %v1592_v10  ;;  %5330 = vmatprep.subr.mxu0 %v6221_v21 }
 0x26c   : > { %5332 = vmatprep.mubr.f32.mxu0 %v996_v40  ;;  %5363 = vmatprep.subr.mxu1 %v6232_v34 }
 0x26d   : > { %5331 = vmatpush3.msra.mxu0 %v6221_v21  ;;  %v1546_v21 = vand.u32 4294901760, %v1545_v18 }
 0x26e   : > { %5342 = vmatprep.subr.mxu0 %v6232_v34  ;;  %5354 = vmatmul.mubr.f32.vlgmr.msra.gmra.mxu1 %v1542_v20 }
 0x26f   : > { %5333 = vmatmul.mubr.f32.vlgmr.msra.gmra.mxu0 %v1006_v47  ;;  %5364 = vmatpush3.xpose.msra.mxu1 %v6232_v34 }
 0x270   : > { %5343 = vmatpush3.xpose.msra.mxu0 %v6232_v34  ;;  %5367 = vmatprep.mubr.f32.mxu1 %v1534_v22 }
 0x271   : > { %5344 = vmatprep.subr.mxu0 %v6237_v37  ;;  %5346 = vmatprep.mubr.f32.mxu0 %v1536_v19 }
 0x272   : > { %5365 = vmatprep.subr.mxu1 %v6237_v37 }
 0x273   : > { %5366 = vmatpush3.xpose.msra.mxu1 %v6237_v37 }
 0x274   : > { %5345 = vmatpush3.xpose.msra.mxu0 %v6237_v37  ;;  %5377 = vmatprep.subr.mxu1 %v6232_v34 }
 0x275   : > { %5356 = vmatprep.subr.mxu0 %v6240_v38 }
 0x276   : > { %5368 = vmatmul.mubr.f32.vlgmr.msra.gmra.mxu1 %v1544_v16 }
 0x277   : > { %5347 = vmatmul.mubr.f32.vlgmr.msra.gmra.mxu0 %v1546_v21  ;;  %5378 = vmatpush3.xpose.msra.mxu1 %v6232_v34 }
 0x278   : > { %5357 = vmatpush3.xpose.msra.mxu0 %v6240_v38  ;;  %5360 = vmatprep.mubr.f32.mxu0 %v1533_v62 }
 0x279   : > { %5381 = vmatprep.mubr.f32.mxu1 %v6259_v53  ;;  %5358 = vmatprep.subr.mxu0 %v6247_v43 }
 0x27a   : > { %5379 = vmatprep.subr.mxu1 %v6237_v37 }
 0x27b   : > { %5380 = vmatpush3.xpose.msra.mxu1 %v6237_v37 }
 0x27c   : > { %5359 = vmatpush3.xpose.msra.mxu0 %v6247_v43 }
 0x27d   : > { %5370 = vmatprep.subr.mxu0 %v6252_v46 }
 0x27e   : > { %5382 = vmatmul.mubr.f32.vlgmr.msra.gmra.mxu1 %v1542_v20 }
 0x27f   : > { %5361 = vmatmul.mubr.f32.vlgmr.msra.gmra.mxu0 %v1543_v14 }
 0x280   : > { %5371 = vmatpush3.xpose.msra.mxu0 %v6252_v46  ;;  %5374 = vmatprep.mubr.f32.mxu0 %v6259_v53 }
 0x281   : > { %5372 = vmatprep.subr.mxu0 %v6256_v52 }
 0x284   : > { %5373 = vmatpush3.xpose.msra.mxu0 %v6256_v52 }
 0x287   : > { %5375 = vmatmul.mubr.f32.vlgmr.msra.gmra.mxu0 %v1542_v20 }
 0x31c   : > { %v5313_v23 = vpop.f32.mrf.mxu1 }
 0x31e   : > { %v1093_v24 = vpop.f32.mrf.mxu1 }
 0x321   : > { %v5327_v28 = vpop.f32.mrf.mxu1 }
 0x323   : > { %v1257_v32 = vpop.f32.mrf.mxu1 }
 0x324   : > { %v5306_v25 = vpop.f32.mrf.mxu0 }
 0x325   : > { %v1100_v26 = vadd.f32 %v5313_v23, %v5306_v25  ;;  %v6313_v25 = vld [vmem:[#allocation3 + $0x18] sm:$0xff] }
 0x326   : > { %v1002_v27 = vpop.f32.mrf.mxu0  ;;  %v5341_v38 = vpop.f32.mrf.mxu1 }
 0x327   : > { %v1094_v29 = vadd.f32 %v1093_v24, %v1002_v27  ;;  %v6315_v27 = vld [vmem:[#allocation3 + $0x10] sm:$0xff] }
 0x328   : > { %v1421_v45 = vpop.f32.mrf.mxu1 }
 0x329   : > { %v5320_v30 = vpop.f32.mrf.mxu0 }
 0x32a   : > { %v1183_v31 = vadd.f32 %v5320_v30, %v1100_v26 }
 0x32b   : > { %v1175_v33 = vpop.f32.mrf.mxu0 }
 0x32c   : > { %v1176_v34 = vadd.f32 %v1175_v33, %v1094_v29  ;;  %v1266_v35 = vadd.f32 %v5327_v28, %v1183_v31 }
 0x32e   : > { %v1258_v37 = vadd.f32 %v1257_v32, %v1176_v34  ;;  %v5355_v48 = vpop.f32.mrf.mxu1 }
 0x32f   : > { %v5334_v39 = vpop.f32.mrf.mxu0 }
 0x330   : > { %v1349_v40 = vadd.f32 %v5334_v39, %v1266_v35  ;;  %v1629_v50 = vpop.f32.mrf.mxu1 }
 0x331   : > { %v1342_v41 = vpop.f32.mrf.mxu0 }
 0x332   : > { %v6303_v43 = vadd.f32 %v5341_v38, %v1349_v40  ;;  %v1343_v44 = vadd.f32 %v1342_v41, %v1258_v37 }
 0x334   : > { %v6305_v46 = vadd.f32 %v1421_v45, %v1343_v44 }
 0x336   : > { %v5369_v53 = vpop.f32.mrf.mxu1 }
 0x337   : > { %v5348_v47 = vpop.f32.mrf.mxu0 }
 0x338   : > { %v1636_v52 = vadd.f32 %v5355_v48, %v5348_v47  ;;  %v1793_v60 = vpop.f32.mrf.mxu1 }
 0x339   : > { %v1538_v49 = vpop.f32.mrf.mxu0 }
 0x33a   : > { %v1630_v56 = vadd.f32 %v1629_v50, %v1538_v49 }
 0x33e   : > { %v5383_v62 = vpop.f32.mrf.mxu1 }
 0x33f   : > { %v5362_v51 = vpop.f32.mrf.mxu0 }
 0x340   : > { %v1719_v57 = vadd.f32 %v5362_v51, %v1636_v52  ;;  %v1957_v14 = vpop.f32.mrf.mxu1 }
 0x341   : > { %v1711_v54 = vpop.f32.mrf.mxu0 }
 0x342   : > { %v1712_v59 = vadd.f32 %v1711_v54, %v1630_v56  ;;  %v1802_v61 = vadd.f32 %v5369_v53, %v1719_v57 }
 0x344   : > { %v1794_v5 = vadd.f32 %v1793_v60, %v1712_v59 }
 0x347   : > { %v5376_v63 = vpop.f32.mrf.mxu0 }
 0x348   : > { %v1885_v3 = vadd.f32 %v5376_v63, %v1802_v61 }
 0x349   : > { %v1878_v10 = vpop.f32.mrf.mxu0 }
 0x34a   : > { %v1964_v20 = vadd.f32 %v5383_v62, %v1885_v3  ;;  %v1879_v22 = vadd.f32 %v1878_v10, %v1794_v5 }
 0x34c   : > { %v1968_v17 = vmul.f32 0.17677669, %v1964_v20  ;;  %v1958_v16 = vadd.f32 %v1957_v14, %v1879_v22 }
 0x34e   : > { %v1967_v19 = vmul.f32 0.17677669, %v1958_v16  ;;  %v1970_v18 = vsel %vm6138_vm6, -1e+30, %v1968_v17 }
 0x34f   : > { %v1980_v21 = vsel %vm877_vm7, %v1970_v18, -inf }
 0x350   : > { %1981 = vmax.xlane.f32.xlu0 %v1980_v21  ;;  %v1969_v23 = vsel %vm6134_vm5, -1e+30, %v1967_v19 }
 0x351   : > { %v1977_v24 = vsel %vm877_vm7, %v1969_v23, -inf }
 0x352   : > { %1978 = vmax.xlane.f32.xlu1 %v1977_v24 }
 0x3d9   : > { %v1982_v26 = vpop.xlane.xlu0 %1981 }
 0x3da   : > { %v6318_v28 = vmax.f32 %v6313_v25, %v1982_v26 }
 0x3db   : > { %v1979_v29 = vpop.xlane.xlu1 %1978 }
 0x3dc   : > { %v2002_v30 = vsub.f32 %v6313_v25, %v6318_v28  ;;  %2018 = vst.msk [vmem:[#allocation3 + $0x18] sm:$0xff] %vm311_vm1, %v6318_v28  ;;  %v6325_v31 = vmax.f32 %v6315_v27, %v1979_v29  ;;  %1992 = vperm.xlu0 %5677, %v6318_v28  }
 0x3de   : > { %v2001_v32 = vsub.f32 %v6315_v27, %v6325_v31  ;;  %2017 = vst.msk [vmem:[#allocation3 + $0x10] sm:$0xff] %vm311_vm1, %v6325_v31  ;;  %1987 = vperm.xlu1 %5676, %v6325_v31   ;;  %v2005_v4 = vmul.f32 1.442695, %v2002_v30 }
 0x3e2   : > { %2025 = vrot.lane.b32.xlu1 %v6188_v13, %s5910_s18 }
 0x3e6   : > { %2023 = vrot.lane.b32.xlu1 %v6194_v15, %s5910_s18 }
 0x3ea   : > { %2570 = vrot.lane.b32.xlu1 %v6107_v0, %s5912_s5 }
 0x3ee   : > { %2568 = vrot.lane.b32.xlu1 %v6110_v1, %s5912_s5 }
 0x3f2   : > { %2564 = vrot.lane.b32.xlu1 %v6113_v2, %s5912_s5 }
 0x3f6   : > { %2566 = vrot.lane.b32.xlu1 %v6122_v6, %s5912_s5 }
 0x457   : > { %v1993_v33 = vpop.permute.xlu0 %1992 }
 0x458   : > { %v1996_v34 = vsub.f32 %v1970_v18, %v1993_v33 }
 0x459   : > { %v1988_v35 = vpop.permute.xlu1 %1987 }
 0x45a   : > { %v1999_v37 = vmul.f32 1.442695, %v1996_v34  ;;  %v1995_v38 = vsub.f32 %v1969_v23, %v1988_v35 }
 0x45c   : > { %5682 = vpow2.f32 %v1999_v37  ;;  %v1997_v39 = vmul.f32 1.442695, %v1995_v38 }
 0x45d   : > { %v2026_v40 = vpop.permute.xlu1 %2025 }
 0x45e   : > { %5684 = vpow2.f32 %v1997_v39  ;;  %v2064_v41 = vand.u32 4294901760, %v2026_v40 }
 0x460   : > { %v6345_v0 = vsub.f32 %v2026_v40, %v2064_v41  ;;  %5384 = vmatprep.subr.mxu0 %v2064_v41 }
 0x461   : > { %v2024_v1 = vpop.permute.xlu1 %2023  ;;  %5385 = vmatpush3.msra.mxu0 %v2064_v41 }
 0x462   : > { %v2067_v44 = vand.u32 4294901760, %v2024_v1  ;;  %v6348_v2 = vand.u32 4294901760, %v6345_v0 }
 0x464   : > { %v6350_v6 = vsub.f32 %v2024_v1, %v2067_v44  ;;  %5386 = vmatprep.subr.mxu0 %v2067_v44  ;;  %v2154_v45 = vsub.f32 %v6345_v0, %v6348_v2 }
 0x465   : > { %5387 = vmatpush3.msra.mxu0 %v2067_v44  ;;  %v2571_v47 = vpop.permute.xlu1 %2570 }
 0x466   : > { %v2155_v48 = vand.u32 4294901760, %v2154_v45  ;;  %5398 = vmatprep.subr.mxu0 %v6345_v0  ;;  %v2578_v49 = vsel %vm354_vm0, %v2571_v47, 0  ;;  %v6357_v50 = vand.u32 4294901760, %v6350_v6 }
 0x467   : > { %v6359_v51 = vand.u32 4294901760, %v2578_v49 }
 0x468   : > { %5391 = vmatprep.subr.mxu1 %v2155_v48  ;;  %v2161_v52 = vsub.f32 %v6350_v6, %v6357_v50 }
 0x469   : > { %v6363_v53 = vpop.eup %5682  ;;  %5392 = vmatpush3.msra.mxu1 %v2155_v48  ;;  %v6366_v54 = vsub.f32 %v2578_v49, %v6359_v51  ;;  %v2569_v56 = vpop.permute.xlu1 %2568 }
 0x46a   : > { %v2162_v57 = vand.u32 4294901760, %v2161_v52  ;;  %v2576_v59 = vsel %vm354_vm0, %v2569_v56, 0  ;;  %v2033_v60 = vsel %vm877_vm7, %v6363_v53, 0 }
 0x46b   : > { %v6371_v61 = vpop.eup %5684  ;;  %v6373_v62 = vand.u32 4294901760, %v2576_v59  ;;  %v6375_v63 = vand.u32 4294901760, %v2033_v60  ;;  %v6380_v5 = vand.u32 4294901760, %v6366_v54 }
 0x46c   : > { %5393 = vmatprep.subr.mxu1 %v2162_v57  ;;  %v2030_v3 = vsel %vm877_vm7, %v6371_v61, 0 }
 0x46d   : > { %5394 = vmatpush3.msra.mxu1 %v2162_v57  ;;  %v2102_v10 = vand.u32 4294901760, %v2030_v3  ;;  %v6383_v20 = vsub.f32 %v2576_v59, %v6373_v62  ;;  %v2113_v22 = vsub.f32 %v2033_v60, %v6375_v63  ;;  %v2565_v14 = vpop.permute.xlu1 %2564  ;;  %v2699_v21 = vsub.f32 %v6366_v54, %v6380_v5 }
 0x46e   : > { %5405 = vmatprep.subr.mxu1 %v2064_v41  ;;  %v2572_v17 = vsel %vm354_vm0, %v2565_v14, 0 }
 0x46f   : > { %5395 = vmatprep.mubr.f32.mxu1 %v2102_v10  ;;  %v2103_v16 = vsub.f32 %v2030_v3, %v2102_v10  ;;  %v2114_v19 = vand.u32 4294901760, %v2113_v22  ;;  %v6388_v18 = vand.u32 4294901760, %v2572_v17  ;;  %v6393_v23 = vand.u32 4294901760, %v6383_v20 }
 0x470   : > { %5396 = vmatmul.mubr.f32.vlgmr.msra.gmra.mxu1 %v6375_v63  ;;  %v2700_v35 = vand.u32 4294901760, %v2699_v21 }
 0x471   : > { %5406 = vmatpush3.msra.mxu1 %v2064_v41  ;;  %v2104_v24 = vand.u32 4294901760, %v2103_v16  ;;  %v2115_v26 = vsub.f32 %v2113_v22, %v2114_v19  ;;  %v2567_v29 = vpop.permute.xlu1 %2566  ;;  %v2648_v34 = vsub.f32 %v2572_v17, %v6388_v18  ;;  %v2706_v37 = vsub.f32 %v6383_v20, %v6393_v23 }
 0x472   : > { %5407 = vmatprep.subr.mxu1 %v2067_v44  ;;  %v2574_v39 = vsel %vm354_vm0, %v2567_v29, 0 }
 0x473   : > { %5408 = vmatpush3.msra.mxu1 %v2067_v44  ;;  %5409 = vmatprep.mubr.f32.mxu1 %v2104_v24  ;;  %v2105_v33 = vsub.f32 %v2103_v16, %v2104_v24  ;;  %v2116_v40 = vand.u32 4294901760, %v2115_v26  ;;  %v2657_v1 = vand.u32 4294901760, %v2574_v39  ;;  %v2707_v45 = vand.u32 4294901760, %v2706_v37 }
 0x474   : > { %5419 = vmatprep.subr.mxu1 %v2064_v41  ;;  %5410 = vmatmul.mubr.f32.vlgmr.msra.gmra.mxu1 %v2114_v19  ;;  %v2649_v47 = vand.u32 4294901760, %v2648_v34 }
 0x475   : > { %5420 = vmatpush3.msra.mxu1 %v2064_v41  ;;  %5423 = vmatprep.mubr.f32.mxu1 %v2102_v10  ;;  %v2106_v38 = vand.u32 4294901760, %v2105_v33  ;;  %v2658_v41 = vsub.f32 %v2574_v39, %v2657_v1 }
 0x476   : > { %5421 = vmatprep.subr.mxu1 %v2067_v44 }
 0x477   : > { %5422 = vmatpush3.msra.mxu1 %v2067_v44  ;;  %5388 = vmatprep.mubr.f32.mxu0 %v2106_v38  ;;  %v2650_v44 = vsub.f32 %v2648_v34, %v2649_v47 }
 0x478   : > { %5433 = vmatprep.subr.mxu1 %v2700_v35  ;;  %5389 = vmatmul.mubr.f32.vlgmr.msra.gmra.mxu0 %v2116_v40 }
 0x479   : > { %5399 = vmatpush3.msra.mxu0 %v6345_v0  ;;  %5424 = vmatmul.mubr.f32.vlgmr.msra.gmra.mxu1 %v6375_v63  ;;  %v2659_v0 = vand.u32 4294901760, %v2658_v41 }
 0x47a   : > { %5434 = vmatpush3.xpose.msra.mxu1 %v2700_v35  ;;  %5400 = vmatprep.subr.mxu0 %v6350_v6 }
 0x47b   : > { %5402 = vmatprep.mubr.f32.mxu0 %v2103_v16  ;;  %5401 = vmatpush3.msra.mxu0 %v6350_v6  ;;  %v2651_v6 = vand.u32 4294901760, %v2650_v44 }
 0x47c   : > { %5412 = vmatprep.subr.mxu0 %v6348_v2  ;;  %5435 = vmatprep.subr.mxu1 %v2707_v45 }
 0x47d   : > { %5403 = vmatmul.mubr.f32.vlgmr.msra.gmra.mxu0 %v2113_v22  ;;  %5437 = vmatprep.mubr.f32.mxu1 %v6388_v18 }
 0x47e   : > { %5413 = vmatpush3.msra.mxu0 %v6348_v2  ;;  %5436 = vmatpush3.xpose.msra.mxu1 %v2707_v45  ;;  %v2660_v2 = vsub.f32 %v2658_v41, %v2659_v0 }
 0x47f   : > { %5414 = vmatprep.subr.mxu0 %v6357_v50  ;;  %5416 = vmatprep.mubr.f32.mxu0 %v2102_v10 }
 0x480   : > { %5447 = vmatprep.subr.mxu1 %v6359_v51  ;;  %5415 = vmatpush3.msra.mxu0 %v6357_v50  ;;  %v2661_v48 = vand.u32 4294901760, %v2660_v2 }
 0x481   : > { %5426 = vmatprep.subr.mxu0 %v6359_v51  ;;  %5438 = vmatmul.mubr.f32.vlgmr.msra.gmra.mxu1 %v2657_v1 }
 0x482   : > { %5417 = vmatmul.mubr.f32.vlgmr.msra.gmra.mxu0 %v6375_v63  ;;  %5448 = vmatpush3.xpose.msra.mxu1 %v6359_v51 }
 0x483   : > { %5427 = vmatpush3.xpose.msra.mxu0 %v6359_v51  ;;  %5451 = vmatprep.mubr.f32.mxu1 %v2649_v47 }
 0x484   : > { %5428 = vmatprep.subr.mxu0 %v6373_v62  ;;  %5430 = vmatprep.mubr.f32.mxu0 %v2651_v6 }
 0x485   : > { %5449 = vmatprep.subr.mxu1 %v6373_v62 }
 0x486   : > { %5450 = vmatpush3.xpose.msra.mxu1 %v6373_v62 }
 0x487   : > { %5429 = vmatpush3.xpose.msra.mxu0 %v6373_v62  ;;  %5461 = vmatprep.subr.mxu1 %v6359_v51 }
 0x488   : > { %5440 = vmatprep.subr.mxu0 %v6366_v54 }
 0x489   : > { %5452 = vmatmul.mubr.f32.vlgmr.msra.gmra.mxu1 %v2659_v0 }
 0x48a   : > { %5431 = vmatmul.mubr.f32.vlgmr.msra.gmra.mxu0 %v2661_v48  ;;  %5462 = vmatpush3.xpose.msra.mxu1 %v6359_v51 }
 0x48b   : > { %5441 = vmatpush3.xpose.msra.mxu0 %v6366_v54  ;;  %5444 = vmatprep.mubr.f32.mxu0 %v2648_v34 }
 0x48c   : > { %5465 = vmatprep.mubr.f32.mxu1 %v6388_v18  ;;  %5442 = vmatprep.subr.mxu0 %v6383_v20 }
 0x48d   : > { %5463 = vmatprep.subr.mxu1 %v6373_v62 }
 0x48e   : > { %5464 = vmatpush3.xpose.msra.mxu1 %v6373_v62 }
 0x48f   : > { %5443 = vmatpush3.xpose.msra.mxu0 %v6383_v20 }
 0x490   : > { %5454 = vmatprep.subr.mxu0 %v6380_v5 }
 0x491   : > { %5466 = vmatmul.mubr.f32.vlgmr.msra.gmra.mxu1 %v2657_v1 }
 0x492   : > { %5445 = vmatmul.mubr.f32.vlgmr.msra.gmra.mxu0 %v2658_v41 }
 0x493   : > { %5455 = vmatpush3.xpose.msra.mxu0 %v6380_v5  ;;  %5458 = vmatprep.mubr.f32.mxu0 %v6388_v18 }
 0x494   : > { %5456 = vmatprep.subr.mxu0 %v6393_v23 }
 0x497   : > { %5457 = vmatpush3.xpose.msra.mxu0 %v6393_v23 }
 0x49a   : > { %5459 = vmatmul.mubr.f32.vlgmr.msra.gmra.mxu0 %v2657_v1 }
 0x530   : > { %v5397_v49 = vpop.f32.mrf.mxu1 }
 0x532   : > { %v2199_v50 = vpop.f32.mrf.mxu1 }
 0x534   : > { %v5411_v54 = vpop.f32.mrf.mxu1 }
 0x536   : > { %v2363_v60 = vpop.f32.mrf.mxu1 }
 0x538   : > { %v5390_v51 = vpop.f32.mrf.mxu0 }
 0x539   : > { %v2206_v52 = vadd.f32 %v5397_v49, %v5390_v51  ;;  %v5425_v10 = vpop.f32.mrf.mxu1 }
 0x53a   : > { %v2108_v56 = vpop.f32.mrf.mxu0 }
 0x53b   : > { %v2200_v57 = vadd.f32 %v2199_v50, %v2108_v56  ;;  %v2527_v18 = vpop.f32.mrf.mxu1 }
 0x53d   : > { %v5404_v59 = vpop.f32.mrf.mxu0 }
 0x53e   : > { %v2289_v62 = vadd.f32 %v5404_v59, %v2206_v52 }
 0x53f   : > { %v2281_v63 = vpop.f32.mrf.mxu0 }
 0x540   : > { %v2282_v3 = vadd.f32 %v2281_v63, %v2200_v57  ;;  %v2372_v5 = vadd.f32 %v5411_v54, %v2289_v62  ;;  %v6443_v63 = vld [vmem:[#allocation3 + $0x20] sm:$0xff] }
 0x541   : > { %v5439_v24 = vpop.f32.mrf.mxu1 }
 0x542   : > { %v5418_v20 = vpop.f32.mrf.mxu0  ;;  %v2364_v22 = vadd.f32 %v2363_v60, %v2282_v3  ;;  %v6441_v60 = vld [vmem:[#allocation3 + $0x28] sm:$0xff] }
 0x543   : > { %v2455_v14 = vadd.f32 %v5418_v20, %v2372_v5  ;;  %v2744_v29 = vpop.f32.mrf.mxu1 }
 0x544   : > { %v2448_v17 = vpop.f32.mrf.mxu0 }
 0x545   : > { %v6431_v16 = vadd.f32 %v5425_v10, %v2455_v14  ;;  %v2449_v19 = vadd.f32 %v2448_v17, %v2364_v22  ;;  %v5726_v14 = vld [vmem:[%s6100_s11 + $0x8] sm:$0xff]  ;;  %v5727_v17 = vld [vmem:[%s6092_s10] sm:$0xff] }
 0x547   : > { %v6433_v21 = vadd.f32 %v2527_v18, %v2449_v19  ;;  %v5728_v19 = vld [vmem:[%s6100_s11] sm:$0xff]  ;;  %v5729_v18 = vld [vmem:[%s6092_s10 + $0x8] sm:$0xff] }
 0x549   : > { %v5453_v35 = vpop.f32.mrf.mxu1 }
 0x54a   : > { %v5432_v23 = vpop.f32.mrf.mxu0 }
 0x54b   : > { %v2751_v34 = vadd.f32 %v5439_v24, %v5432_v23  ;;  %v2908_v1 = vpop.f32.mrf.mxu1 }
 0x54c   : > { %v2653_v26 = vpop.f32.mrf.mxu0 }
 0x54d   : > { %v2745_v38 = vadd.f32 %v2744_v29, %v2653_v26 }
 0x551   : > { %v5467_v47 = vpop.f32.mrf.mxu1 }
 0x552   : > { %v5446_v33 = vpop.f32.mrf.mxu0 }
 0x553   : > { %v2834_v39 = vadd.f32 %v5446_v33, %v2751_v34  ;;  %v3072_v49 = vpop.f32.mrf.mxu1 }
 0x554   : > { %v2826_v37 = vpop.f32.mrf.mxu0 }
 0x555   : > { %v2827_v40 = vadd.f32 %v2826_v37, %v2745_v38  ;;  %v2917_v45 = vadd.f32 %v5453_v35, %v2834_v39 }
 0x557   : > { %v2909_v0 = vadd.f32 %v2908_v1, %v2827_v40 }
 0x55a   : > { %v5460_v41 = vpop.f32.mrf.mxu0 }
 0x55b   : > { %v3000_v44 = vadd.f32 %v5460_v41, %v2917_v45 }
 0x55c   : > { %v2993_v6 = vpop.f32.mrf.mxu0 }
 0x55d   : > { %v3079_v2 = vadd.f32 %v5467_v47, %v3000_v44  ;;  %v2994_v48 = vadd.f32 %v2993_v6, %v2909_v0 }
 0x55f   : > { %v3083_v50 = vmul.f32 0.17677669, %v3079_v2  ;;  %v3073_v51 = vadd.f32 %v3072_v49, %v2994_v48 }
 0x561   : > { %v3082_v52 = vmul.f32 0.17677669, %v3073_v51  ;;  %v3085_v54 = vsel %vm6138_vm6, -1e+30, %v3083_v50 }
 0x562   : > { %v3095_v56 = vsel %vm877_vm7, %v3085_v54, -inf }
 0x563   : > { %3096 = vmax.xlane.f32.xlu0 %v3095_v56  ;;  %v3084_v57 = vsel %vm6134_vm5, -1e+30, %v3082_v52 }
 0x564   : > { %v3092_v59 = vsel %vm877_vm7, %v3084_v57, -inf }
 0x565   : > { %3093 = vmax.xlane.f32.xlu1 %v3092_v59 }
 0x5ec   : > { %v3097_v62 = vpop.xlane.xlu0 %3096 }
 0x5ed   : > { %v6446_v3 = vmax.f32 %v6441_v60, %v3097_v62 }
 0x5ee   : > { %v3094_v5 = vpop.xlane.xlu1 %3093 }
 0x5ef   : > { %v3117_v10 = vsub.f32 %v6441_v60, %v6446_v3  ;;  %3133 = vst.msk [vmem:[#allocation3 + $0x28] sm:$0xff] %vm311_vm1, %v6446_v3  ;;  %v6453_v20 = vmax.f32 %v6443_v63, %v3094_v5  ;;  %3107 = vperm.xlu0 %5677, %v6446_v3   ;;  %v875_v3 = vld [vmem:[#allocation4] sm:$0xff] }
 0x5f1   : > { %v3116_v22 = vsub.f32 %v6443_v63, %v6453_v20  ;;  %3132 = vst.msk [vmem:[#allocation3 + $0x20] sm:$0xff] %vm311_vm1, %v6453_v20  ;;  %3102 = vperm.xlu1 %5676, %v6453_v20  }
 0x5f3   : > { %3683 = vrot.lane.b32.xlu0 %v5726_v14, %s5913_s7 }
 0x5f5   : > { %3138 = vrot.lane.b32.xlu1 %v6188_v13, %s5912_s5 }
 0x5f7   : > { %3677 = vrot.lane.b32.xlu0 %v5727_v17, %s5913_s7 }
 0x5f9   : > { %3136 = vrot.lane.b32.xlu1 %v6194_v15, %s5912_s5 }
 0x5fd   : > { %3681 = vrot.lane.b32.xlu1 %v5728_v19, %s5913_s7 }
 0x601   : > { %3679 = vrot.lane.b32.xlu1 %v5729_v18, %s5913_s7 }
 0x66a   : > { %v3108_v23 = vpop.permute.xlu0 %3107 }
 0x66b   : > { %v3111_v24 = vsub.f32 %v3085_v54, %v3108_v23 }
 0x66c   : > { %v3103_v26 = vpop.permute.xlu1 %3102 }
 0x66d   : > { %v3114_v29 = vmul.f32 1.442695, %v3111_v24  ;;  %v3110_v33 = vsub.f32 %v3084_v57, %v3103_v26 }
 0x66e   : > { %v3684_v37 = vpop.permute.xlu0 %3683 }
 0x66f   : > { %5686 = vpow2.f32 %v3114_v29  ;;  %v3112_v34 = vmul.f32 1.442695, %v3110_v33  ;;  %v3691_v39 = vsel %vm354_vm0, %v3684_v37, 0 }
 0x670   : > { %v3139_v13 = vpop.permute.xlu1 %3138  ;;  %v6483_v41 = vand.u32 4294901760, %v3691_v39 }
 0x671   : > { %5688 = vpow2.f32 %v3112_v34  ;;  %v3177_v35 = vand.u32 4294901760, %v3139_v13 }
 0x672   : > { %v6491_v48 = vsub.f32 %v3691_v39, %v6483_v41  ;;  %v3678_v59 = vpop.permute.xlu0 %3677 }
 0x673   : > { %v6473_v38 = vsub.f32 %v3139_v13, %v3177_v35  ;;  %5468 = vmatprep.subr.mxu0 %v3177_v35  ;;  %v3685_v18 = vsel %vm354_vm0, %v3678_v59, 0 }
 0x674   : > { %v3137_v15 = vpop.permute.xlu1 %3136  ;;  %5469 = vmatpush3.msra.mxu0 %v3177_v35  ;;  %v6511_v14 = vand.u32 4294901760, %v6491_v48  ;;  %v6521_v34 = vand.u32 4294901760, %v3685_v18 }
 0x675   : > { %v3180_v40 = vand.u32 4294901760, %v3137_v15  ;;  %v6477_v1 = vand.u32 4294901760, %v6473_v38 }
 0x676   : > { %v3812_v26 = vsub.f32 %v6491_v48, %v6511_v14 }
 0x677   : > { %v6479_v45 = vsub.f32 %v3137_v15, %v3180_v40  ;;  %5470 = vmatprep.subr.mxu0 %v3180_v40  ;;  %v3267_v47 = vsub.f32 %v6473_v38, %v6477_v1 }
 0x678   : > { %5471 = vmatpush3.msra.mxu0 %v3180_v40  ;;  %v3682_v44 = vpop.permute.xlu1 %3681  ;;  %v3813_v39 = vand.u32 4294901760, %v3812_v26 }
 0x679   : > { %v3268_v0 = vand.u32 4294901760, %v3267_v47  ;;  %5482 = vmatprep.subr.mxu0 %v6473_v38  ;;  %v6487_v6 = vand.u32 4294901760, %v6479_v45  ;;  %v3689_v2 = vsel %vm354_vm0, %v3682_v44, 0  ;;  %v3761_v44 = vsub.f32 %v3685_v18, %v6521_v34 }
 0x67a   : > { %v6495_v50 = vand.u32 4294901760, %v3689_v2 }
 0x67b   : > { %5475 = vmatprep.subr.mxu1 %v3268_v0  ;;  %v3274_v49 = vsub.f32 %v6479_v45, %v6487_v6  ;;  %v3762_v59 = vand.u32 4294901760, %v3761_v44 }
 0x67c   : > { %v6497_v51 = vpop.eup %5686  ;;  %5476 = vmatpush3.msra.mxu1 %v3268_v0  ;;  %v6508_v5 = vsub.f32 %v3689_v2, %v6495_v50  ;;  %v3680_v37 = vpop.permute.xlu1 %3679 }
 0x67d   : > { %v3275_v52 = vand.u32 4294901760, %v3274_v49  ;;  %v3146_v54 = vsel %vm877_vm7, %v6497_v51, 0  ;;  %v3687_v2 = vsel %vm354_vm0, %v3680_v37, 0 }
 0x67e   : > { %v6501_v56 = vpop.eup %5688  ;;  %v6503_v57 = vand.u32 4294901760, %v3146_v54  ;;  %v6519_v29 = vand.u32 4294901760, %v6508_v5 }
 0x67f   : > { %5477 = vmatprep.subr.mxu1 %v3275_v52  ;;  %v3143_v62 = vsel %vm877_vm7, %v6501_v56, 0 }
 0x680   : > { %5478 = vmatpush3.msra.mxu1 %v3275_v52  ;;  %v3215_v17 = vand.u32 4294901760, %v3143_v62  ;;  %v3226_v19 = vsub.f32 %v3146_v54, %v6503_v57  ;;  %v3819_v47 = vsub.f32 %v6508_v5, %v6519_v29  ;;  %v3770_v52 = vand.u32 4294901760, %v3687_v2 }
 0x681   : > { %5489 = vmatprep.subr.mxu1 %v3177_v35 }
 0x682   : > { %5479 = vmatprep.mubr.f32.mxu1 %v3215_v17  ;;  %v3216_v23 = vsub.f32 %v3143_v62, %v3215_v17  ;;  %v3227_v24 = vand.u32 4294901760, %v3226_v19  ;;  %v3820_v54 = vand.u32 4294901760, %v3819_v47 }
 0x683   : > { %5480 = vmatmul.mubr.f32.vlgmr.msra.gmra.mxu1 %v6503_v57 }
 0x684   : > { %5490 = vmatpush3.msra.mxu1 %v3177_v35  ;;  %v3217_v33 = vand.u32 4294901760, %v3216_v23  ;;  %v3228_v13 = vsub.f32 %v3226_v19, %v3227_v24 }
 0x685   : > { %5491 = vmatprep.subr.mxu1 %v3180_v40 }
 0x686   : > { %5492 = vmatpush3.msra.mxu1 %v3180_v40  ;;  %5493 = vmatprep.mubr.f32.mxu1 %v3217_v33  ;;  %v3218_v15 = vsub.f32 %v3216_v23, %v3217_v33  ;;  %v3229_v49 = vand.u32 4294901760, %v3228_v13 }
 0x687   : > { %5503 = vmatprep.subr.mxu1 %v3177_v35  ;;  %5494 = vmatmul.mubr.f32.vlgmr.msra.gmra.mxu1 %v3227_v24 }
 0x688   : > { %5504 = vmatpush3.msra.mxu1 %v3177_v35  ;;  %5507 = vmatprep.mubr.f32.mxu1 %v3215_v17  ;;  %v3219_v0 = vand.u32 4294901760, %v3218_v15  ;;  %v3771_v35 = vsub.f32 %v3687_v2, %v3770_v52 }
 0x689   : > { %5505 = vmatprep.subr.mxu1 %v3180_v40 }
 0x68a   : > { %5506 = vmatpush3.msra.mxu1 %v3180_v40  ;;  %5472 = vmatprep.mubr.f32.mxu0 %v3219_v0  ;;  %v3763_v40 = vsub.f32 %v3761_v44, %v3762_v59 }
 0x68b   : > { %5517 = vmatprep.subr.mxu1 %v3813_v39  ;;  %5473 = vmatmul.mubr.f32.vlgmr.msra.gmra.mxu0 %v3229_v49 }
 0x68c   : > { %5483 = vmatpush3.msra.mxu0 %v6473_v38  ;;  %5508 = vmatmul.mubr.f32.vlgmr.msra.gmra.mxu1 %v6503_v57  ;;  %v3772_v38 = vand.u32 4294901760, %v3771_v35 }
 0x68d   : > { %5518 = vmatpush3.xpose.msra.mxu1 %v3813_v39  ;;  %5484 = vmatprep.subr.mxu0 %v6479_v45 }
 0x68e   : > { %5486 = vmatprep.mubr.f32.mxu0 %v3216_v23  ;;  %5485 = vmatpush3.msra.mxu0 %v6479_v45  ;;  %v3764_v45 = vand.u32 4294901760, %v3763_v40 }
 0x68f   : > { %5496 = vmatprep.subr.mxu0 %v6477_v1  ;;  %5519 = vmatprep.subr.mxu1 %v3820_v54 }
 0x690   : > { %5487 = vmatmul.mubr.f32.vlgmr.msra.gmra.mxu0 %v3226_v19  ;;  %5521 = vmatprep.mubr.f32.mxu1 %v6521_v34 }
 0x691   : > { %5497 = vmatpush3.msra.mxu0 %v6477_v1  ;;  %5520 = vmatpush3.xpose.msra.mxu1 %v3820_v54  ;;  %v3773_v1 = vsub.f32 %v3771_v35, %v3772_v38 }
 0x692   : > { %5498 = vmatprep.subr.mxu0 %v6487_v6  ;;  %5500 = vmatprep.mubr.f32.mxu0 %v3215_v17 }
 0x693   : > { %5531 = vmatprep.subr.mxu1 %v6483_v41  ;;  %5499 = vmatpush3.msra.mxu0 %v6487_v6  ;;  %v3774_v6 = vand.u32 4294901760, %v3773_v1 }
 0x694   : > { %5510 = vmatprep.subr.mxu0 %v6483_v41  ;;  %5522 = vmatmul.mubr.f32.vlgmr.msra.gmra.mxu1 %v3770_v52 }
 0x695   : > { %5501 = vmatmul.mubr.f32.vlgmr.msra.gmra.mxu0 %v6503_v57  ;;  %5532 = vmatpush3.xpose.msra.mxu1 %v6483_v41 }
 0x696   : > { %5511 = vmatpush3.xpose.msra.mxu0 %v6483_v41  ;;  %5533 = vmatprep.subr.mxu1 %v6495_v50 }
 0x697   : > { %5512 = vmatprep.subr.mxu0 %v6495_v50  ;;  %5535 = vmatprep.mubr.f32.mxu1 %v3762_v59 }
 0x698   : > { %5514 = vmatprep.mubr.f32.mxu0 %v3764_v45 }
 0x699   : > { %5534 = vmatpush3.xpose.msra.mxu1 %v6495_v50 }
 0x69a   : > { %5513 = vmatpush3.xpose.msra.mxu0 %v6495_v50  ;;  %5545 = vmatprep.subr.mxu1 %v6483_v41 }
 0x69b   : > { %5524 = vmatprep.subr.mxu0 %v6491_v48 }
 0x69c   : > { %5536 = vmatmul.mubr.f32.vlgmr.msra.gmra.mxu1 %v3772_v38 }
 0x69d   : > { %5515 = vmatmul.mubr.f32.vlgmr.msra.gmra.mxu0 %v3774_v6  ;;  %5546 = vmatpush3.xpose.msra.mxu1 %v6483_v41 }
 0x69e   : > { %5525 = vmatpush3.xpose.msra.mxu0 %v6491_v48  ;;  %5528 = vmatprep.mubr.f32.mxu0 %v3761_v44 }
 0x69f   : > { %5549 = vmatprep.mubr.f32.mxu1 %v6521_v34  ;;  %5526 = vmatprep.subr.mxu0 %v6508_v5 }
 0x6a0   : > { %5547 = vmatprep.subr.mxu1 %v6495_v50 }
 0x6a1   : > { %5548 = vmatpush3.xpose.msra.mxu1 %v6495_v50 }
 0x6a2   : > { %5527 = vmatpush3.xpose.msra.mxu0 %v6508_v5 }
 0x6a3   : > { %5538 = vmatprep.subr.mxu0 %v6511_v14 }
 0x6a4   : > { %5550 = vmatmul.mubr.f32.vlgmr.msra.gmra.mxu1 %v3770_v52 }
 0x6a5   : > { %5529 = vmatmul.mubr.f32.vlgmr.msra.gmra.mxu0 %v3771_v35 }
 0x6a6   : > { %5539 = vmatpush3.xpose.msra.mxu0 %v6511_v14  ;;  %5542 = vmatprep.mubr.f32.mxu0 %v6521_v34 }
 0x6a7   : > { %5540 = vmatprep.subr.mxu0 %v6519_v29 }
 0x6aa   : > { %5541 = vmatpush3.xpose.msra.mxu0 %v6519_v29 }
 0x6ad   : > { %5543 = vmatmul.mubr.f32.vlgmr.msra.gmra.mxu0 %v3770_v52 }
 0x743   : > { %v5481_v41 = vpop.f32.mrf.mxu1 }
 0x745   : > { %v3312_v48 = vpop.f32.mrf.mxu1 }
 0x747   : > { %v5495_v50 = vpop.f32.mrf.mxu1 }
 0x749   : > { %v3476_v18 = vpop.f32.mrf.mxu1 }
 0x74b   : > { %v5474_v57 = vpop.f32.mrf.mxu0 }
 0x74c   : > { %v3319_v62 = vadd.f32 %v5481_v41, %v5474_v57  ;;  %v5509_v33 = vpop.f32.mrf.mxu1 }
 0x74d   : > { %v3221_v17 = vpop.f32.mrf.mxu0 }
 0x74e   : > { %v3313_v5 = vadd.f32 %v3312_v48, %v3221_v17  ;;  %v3640_v47 = vpop.f32.mrf.mxu1 }
 0x750   : > { %v5488_v19 = vpop.f32.mrf.mxu0 }
 0x751   : > { %v3402_v23 = vadd.f32 %v5488_v19, %v3319_v62 }
 0x752   : > { %v3394_v24 = vpop.f32.mrf.mxu0 }
 0x753   : > { %v3395_v26 = vadd.f32 %v3394_v24, %v3313_v5  ;;  %v3485_v14 = vadd.f32 %v5495_v50, %v3402_v23 }
 0x754   : > { %v5523_v2 = vpop.f32.mrf.mxu1 }
 0x755   : > { %v5502_v34 = vpop.f32.mrf.mxu0  ;;  %v3477_v13 = vadd.f32 %v3476_v18, %v3395_v26 }
 0x756   : > { %v3568_v37 = vadd.f32 %v5502_v34, %v3485_v14  ;;  %v3857_v52 = vpop.f32.mrf.mxu1 }
 0x757   : > { %v3561_v15 = vpop.f32.mrf.mxu0 }
 0x758   : > { %v6559_v29 = vadd.f32 %v5509_v33, %v3568_v37  ;;  %v3562_v39 = vadd.f32 %v3561_v15, %v3477_v13  ;;  %v6569_v37 = vld [vmem:[#allocation3 + $0x38] sm:$0xff] }
 0x75a   : > { %v6561_v44 = vadd.f32 %v3640_v47, %v3562_v39  ;;  %v6571_v39 = vld [vmem:[#allocation3 + $0x30] sm:$0xff] }
 0x75c   : > { %v5537_v35 = vpop.f32.mrf.mxu1 }
 0x75d   : > { %v5516_v0 = vpop.f32.mrf.mxu0 }
 0x75e   : > { %v3864_v59 = vadd.f32 %v5523_v2, %v5516_v0  ;;  %v4021_v6 = vpop.f32.mrf.mxu1 }
 0x75f   : > { %v3766_v49 = vpop.f32.mrf.mxu0 }
 0x760   : > { %v3858_v38 = vadd.f32 %v3857_v52, %v3766_v49  ;;  %v5730_v49 = vld [vmem:[%s6185_s24] sm:$0xff]  ;;  %v5731_v52 = vld [vmem:[%s6185_s24 + $0x8] sm:$0xff] }
 0x764   : > { %v5551_v48 = vpop.f32.mrf.mxu1 }
 0x765   : > { %v5530_v54 = vpop.f32.mrf.mxu0 }
 0x766   : > { %v3947_v45 = vadd.f32 %v5530_v54, %v3864_v59  ;;  %v4185_v18 = vpop.f32.mrf.mxu1  ;;  %v910_v54 = vsel %vm877_vm7, %v6235_v36, 0.0  ;;  %v913_v59 = vsel %vm877_vm7, %v6244_v42, 0.0  ;;  %v2012_v36 = vsel %vm877_vm7, %v6363_v53, 0.0 }
 0x767   : > { %v3939_v40 = vpop.f32.mrf.mxu0  ;;  %v2003_v42 = vmul.f32 1.442695, %v2001_v32 }
 0x768   : > { %v3940_v1 = vadd.f32 %v3939_v40, %v3858_v38  ;;  %v4030_v41 = vadd.f32 %v5537_v35, %v3947_v45  ;;  %v2009_v35 = vsel %vm877_vm7, %v6371_v61, 0.0  ;;  %v904_v40 = vmul.f32 1.442695, %v902_v9 }
 0x769   : > { %v3124_v38 = vsel %vm877_vm7, %v6501_v56, 0.0  ;;  %v3127_v61 = vsel %vm877_vm7, %v6497_v51, 0.0 }
 0x76a   : > { %v4022_v50 = vadd.f32 %v4021_v6, %v3940_v1  ;;  %5690 = vpow2.f32 %v904_v40 }
 0x76b   : > { %5692 = vpow2.f32 %v2003_v42 }
 0x76c   : > { %5694 = vpow2.f32 %v2005_v4  ;;  %v1976_v4 = vld [vmem:[#allocation4 + $0x18] sm:$0xff] }
 0x76d   : > { %v5544_v57 = vpop.f32.mrf.mxu0 }
 0x76e   : > { %v4113_v62 = vadd.f32 %v5544_v57, %v4030_v41 }
 0x76f   : > { %v4106_v17 = vpop.f32.mrf.mxu0 }
 0x770   : > { %v4192_v5 = vadd.f32 %v5551_v48, %v4113_v62  ;;  %v4107_v19 = vadd.f32 %v4106_v17, %v4022_v50 }
 0x772   : > { %v4196_v23 = vmul.f32 0.17677669, %v4192_v5  ;;  %v4186_v24 = vadd.f32 %v4185_v18, %v4107_v19 }
 0x774   : > { %v4195_v26 = vmul.f32 0.17677669, %v4186_v24  ;;  %v4198_v14 = vsel %vm6138_vm6, -1e+30, %v4196_v23 }
 0x775   : > { %v4208_v33 = vsel %vm877_vm7, %v4198_v14, -inf }
 0x776   : > { %4209 = vmax.xlane.f32.xlu1 %v4208_v33  ;;  %v4197_v34 = vsel %vm6134_vm5, -1e+30, %v4195_v26 }
 0x777   : > { %v4205_v13 = vsel %vm877_vm7, %v4197_v34, -inf  ;;  %v6614_v7 = vpop.eup %5690 }
 0x778   : > { %4206 = vmax.xlane.f32.xlu0 %v4205_v13  ;;  %v6617_v9 = vpop.eup %5692 }
 0x779   : > { %v6620_v27 = vpop.eup %5694 }
 0x7ff   : > { %v4210_v15 = vpop.xlane.xlu1 %4209 }
 0x800   : > { %v6574_v47 = vmax.f32 %v6569_v37, %v4210_v15  ;;  %v906_v15 = vmul.f32 1.442695, %v903_v12  ;;  %v3118_v12 = vmul.f32 1.442695, %v3116_v22  ;;  %v876_v22 = vld [vmem:[#allocation4 + $0x8] sm:$0xff] }
 0x801   : > { %v4207_v58 = vpop.xlane.xlu0 %4206 }
 0x802   : > { %v4230_v0 = vsub.f32 %v6569_v37, %v6574_v47  ;;  %4246 = vst.msk [vmem:[#allocation3 + $0x38] sm:$0xff] %vm311_vm1, %v6574_v47  ;;  %v6581_v55 = vmax.f32 %v6571_v39, %v4207_v58  ;;  %4220 = vperm.xlu1 %5676, %v6574_v47  }
 0x804   : > { %v4229_v2 = vsub.f32 %v6571_v39, %v6581_v55  ;;  %4245 = vst.msk [vmem:[#allocation3 + $0x30] sm:$0xff] %vm311_vm1, %v6581_v55  ;;  %4215 = vperm.xlu0 %5677, %v6581_v55   ;;  %v4233_v40 = vmul.f32 1.442695, %v4230_v0  ;;  %v3090_v55 = vld [vmem:[#allocation4 + $0x20] sm:$0xff] }
 0x806   : > { %4249 = vrot.lane.b32.xlu1 %v5730_v49, %s5913_s7 }
 0x808   : > { %4251 = vrot.lane.b32.xlu0 %v5731_v52, %s5913_s7  ;;  %v3120_v52 = vmul.f32 1.442695, %v3117_v10  ;;  %v4231_v10 = vmul.f32 1.442695, %v4229_v2 }
 0x827   : > { %911 = vadd.xlane.f32.xlu0 %v910_v54 }
 0x82a   : > { %914 = vadd.xlane.f32.xlu1 %v913_v59 }
 0x82b   : > { %2010 = vadd.xlane.f32.xlu0 %v2009_v35 }
 0x82e   : > { %3125 = vadd.xlane.f32.xlu1 %v3124_v38 }
 0x82f   : > { %2013 = vadd.xlane.f32.xlu0 %v2012_v36  ;;  %v1975_v36 = vld [vmem:[#allocation4 + $0x10] sm:$0xff] }
 0x830   : > { %v2007_v39 = vmul.f32 %v6617_v9, %v1975_v36 }
 0x833   : > { %3128 = vadd.xlane.f32.xlu0 %v3127_v61 }
 0x83f   : > { %1435 = vperm.xlu1 %5676, %v6614_v7  }
 0x843   : > { %2541 = vperm.xlu1 %5676, %v6617_v9  }
 0x847   : > { %2546 = vperm.xlu1 %5676, %v6620_v27  }
 0x87d   : > { %v4221_v31 = vpop.permute.xlu1 %4220 }
 0x87e   : > { %v4224_v32 = vsub.f32 %v4198_v14, %v4221_v31 }
 0x87f   : > { %v4216_v53 = vpop.permute.xlu0 %4215 }
 0x880   : > { %v4227_v51 = vmul.f32 1.442695, %v4224_v32  ;;  %v4223_v25 = vsub.f32 %v4197_v34, %v4216_v53  ;;  %v3091_v53 = vld [vmem:[#allocation4 + $0x28] sm:$0xff] }
 0x881   : > { %v4250_v28 = vpop.permute.xlu1 %4249 }
 0x882   : > { %5696 = vpow2.f32 %v4227_v51  ;;  %v4225_v30 = vmul.f32 1.442695, %v4223_v25  ;;  %v4293_v56 = vand.u32 4294901760, %v4250_v28 }
 0x883   : > { %v4252_v45 = vpop.permute.xlu0 %4251 }
 0x884   : > { %5698 = vpow2.f32 %v4225_v30  ;;  %v4290_v1 = vand.u32 4294901760, %v4252_v45  ;;  %v4385_v6 = vsub.f32 %v4250_v28, %v4293_v56  ;;  %v5732_v28 = vld [vmem:[#allocation2] sm:$0xff] }
 0x885   : > { %5700 = vpow2.f32 %v906_v15 }
 0x886   : > { %v4378_v41 = vsub.f32 %v4252_v45, %v4290_v1  ;;  %5552 = vmatprep.subr.mxu0 %v4290_v1  ;;  %v6623_v48 = vand.u32 4294901760, %v4385_v6  ;;  %5702 = vpow2.f32 %v3120_v52 }
 0x887   : > { %5553 = vmatpush3.msra.mxu0 %v4290_v1  ;;  %5704 = vpow2.f32 %v3118_v12 }
 0x888   : > { %v4379_v57 = vand.u32 4294901760, %v4378_v41  ;;  %5554 = vmatprep.subr.mxu0 %v4293_v56  ;;  %v4387_v62 = vsub.f32 %v4385_v6, %v6623_v48  ;;  %5706 = vpow2.f32 %v4231_v10 }
 0x889   : > { %5555 = vmatpush3.msra.mxu0 %v4293_v56  ;;  %5708 = vpow2.f32 %v4233_v40 }
 0x88a   : > { %v4380_v50 = vsub.f32 %v4378_v41, %v4379_v57  ;;  %5566 = vmatprep.subr.mxu0 %v4378_v41  ;;  %v4388_v5 = vand.u32 4294901760, %v4387_v62 }
 0x88c   : > { %v4381_v17 = vand.u32 4294901760, %v4380_v50  ;;  %v4203_v50 = vld [vmem:[#allocation4 + $0x30] sm:$0xff] }
 0x88e   : > { %5559 = vmatprep.subr.mxu1 %v4381_v17 }
 0x88f   : > { %v5697_v19 = vpop.eup %5696  ;;  %5560 = vmatpush3.msra.mxu1 %v4381_v17 }
 0x890   : > { %v4240_v18 = vsel %vm877_vm7, %v5697_v19, 0.0  ;;  %5561 = vmatprep.subr.mxu1 %v4388_v5  ;;  %v4259_v23 = vsel %vm877_vm7, %v5697_v19, 0 }
 0x891   : > { %v5699_v24 = vpop.eup %5698  ;;  %4241 = vadd.xlane.f32.xlu0 %v4240_v18  ;;  %5562 = vmatpush3.msra.mxu1 %v4388_v5  ;;  %v4338_v26 = vand.u32 4294901760, %v4259_v23 }
 0x892   : > { %5573 = vmatprep.subr.mxu1 %v4290_v1  ;;  %v4237_v14 = vsel %vm877_vm7, %v5699_v24, 0.0  ;;  %v4256_v33 = vsel %vm877_vm7, %v5699_v24, 0  ;;  %v5701_v60 = vpop.eup %5700 }
 0x893   : > { %4238 = vadd.xlane.f32.xlu1 %v4237_v14  ;;  %v4328_v34 = vand.u32 4294901760, %v4256_v33  ;;  %v4339_v13 = vsub.f32 %v4259_v23, %v4338_v26  ;;  %v5703_v63 = vpop.eup %5702  ;;  %v909_v42 = vmul.f32 %v5701_v60, %v876_v22 }
 0x894   : > { %v5705_v20 = vpop.eup %5704  ;;  %v3123_v25 = vmul.f32 %v5703_v63, %v3091_v53 }
 0x895   : > { %5563 = vmatprep.mubr.f32.mxu1 %v4328_v34  ;;  %v4329_v58 = vsub.f32 %v4256_v33, %v4328_v34  ;;  %v4340_v49 = vand.u32 4294901760, %v4339_v13  ;;  %v3122_v47 = vmul.f32 %v5705_v20, %v3090_v55 }
 0x896   : > { %5564 = vmatmul.mubr.f32.vlgmr.msra.gmra.mxu1 %v4338_v26 }
 0x897   : > { %5574 = vmatpush3.msra.mxu1 %v4290_v1  ;;  %v4330_v54 = vand.u32 4294901760, %v4329_v58  ;;  %v4341_v59 = vsub.f32 %v4339_v13, %v4340_v49 }
 0x898   : > { %5575 = vmatprep.subr.mxu1 %v4293_v56 }
 0x899   : > { %5576 = vmatpush3.msra.mxu1 %v4293_v56  ;;  %5577 = vmatprep.mubr.f32.mxu1 %v4330_v54  ;;  %v4331_v35 = vsub.f32 %v4329_v58, %v4330_v54  ;;  %v4342_v11 = vand.u32 4294901760, %v4341_v59 }
 0x89a   : > { %5587 = vmatprep.subr.mxu1 %v4290_v1  ;;  %5578 = vmatmul.mubr.f32.vlgmr.msra.gmra.mxu1 %v4340_v49 }
 0x89b   : > { %5588 = vmatpush3.msra.mxu1 %v4290_v1  ;;  %5591 = vmatprep.mubr.f32.mxu1 %v4328_v34  ;;  %v4332_v8 = vand.u32 4294901760, %v4331_v35 }
 0x89c   : > { %5589 = vmatprep.subr.mxu1 %v4293_v56 }
 0x89d   : > { %5590 = vmatpush3.msra.mxu1 %v4293_v56  ;;  %5556 = vmatprep.mubr.f32.mxu0 %v4332_v8 }
 0x89e   : > { %5557 = vmatmul.mubr.f32.vlgmr.msra.gmra.mxu0 %v4342_v11  ;;  %5592 = vmatmul.mubr.f32.vlgmr.msra.gmra.mxu1 %v4338_v26 }
 0x89f   : > { %5567 = vmatpush3.msra.mxu0 %v4378_v41  ;;  %5570 = vmatprep.mubr.f32.mxu0 %v4329_v58 }
 0x8a0   : > { %5568 = vmatprep.subr.mxu0 %v4385_v6 }
 0x8a1   : > { %5569 = vmatpush3.msra.mxu0 %v4385_v6  ;;  %v5707_v6 = vpop.eup %5706 }
 0x8a2   : > { %5580 = vmatprep.subr.mxu0 %v4379_v57  ;;  %5571 = vmatmul.mubr.f32.vlgmr.msra.gmra.mxu0 %v4339_v13  ;;  %v5709_v41 = vpop.eup %5708  ;;  %v4235_v18 = vmul.f32 %v5707_v6, %v4203_v50 }
 0x8a3   : > { %5581 = vmatpush3.msra.mxu0 %v4379_v57  ;;  %5584 = vmatprep.mubr.f32.mxu0 %v4328_v34  ;;  %v4204_v57 = vld [vmem:[#allocation4 + $0x38] sm:$0xff] }
 0x8a4   : > { %5582 = vmatprep.subr.mxu0 %v6623_v48  ;;  %2555 = vrot.lane.b32.xlu1 %v6431_v16, %s5913_s7  ;;  %v908_v16 = vmul.f32 %v6614_v7, %v875_v3  ;;  %v2008_v7 = vmul.f32 %v6620_v27, %v1976_v4  ;;  %v4236_v17 = vmul.f32 %v5709_v41, %v4204_v57 }
 0x8a5   : > { %5583 = vmatpush3.msra.mxu0 %v6623_v48 }
 0x8a6   : > { %5585 = vmatmul.mubr.f32.vlgmr.msra.gmra.mxu0 %v4338_v26 }
 0x8a7   : > { %1440 = vperm.xlu0 %5677, %v5701_v60  }
 0x8a8   : > { %3659 = vperm.xlu1 %5676, %v5703_v63  }
 0x8ab   : > { %2553 = vrot.lane.b32.xlu0 %v6433_v21, %s5913_s7 }
 0x8ac   : > { %3668 = vrot.lane.b32.xlu1 %v6559_v29, %s5912_s5 }
 0x8af   : > { %3654 = vperm.xlu0 %5677, %v5705_v20  }
 0x8b0   : > { %v912_v38 = vpop.xlane.xlu0 %911 }
 0x8b1   : > { %v916_v21 = vadd.f32 %v912_v38, %v908_v16 }
 0x8b3   : > { %921 = vst.msk [vmem:[#allocation4] sm:$0xff] %vm311_vm1, %v916_v21  ;;  %v915_v29 = vpop.xlane.xlu1 %914  ;;  %3666 = vrot.lane.b32.xlu0 %v6561_v44, %s5912_s5 }
 0x8b4   : > { %v917_v2 = vadd.f32 %v915_v29, %v909_v42  ;;  %v2011_v61 = vpop.xlane.xlu0 %2010 }
 0x8b5   : > { %v2015_v37 = vadd.f32 %v2011_v61, %v2007_v39 }
 0x8b6   : > { %922 = vst.msk [vmem:[#allocation4 + $0x8] sm:$0xff] %vm311_vm1, %v917_v2 }
 0x8b7   : > { %2019 = vst.msk [vmem:[#allocation4 + $0x10] sm:$0xff] %vm311_vm1, %v2015_v37  ;;  %v3126_v0 = vpop.xlane.xlu1 %3125 }
 0x8b8   : > { %v3130_v31 = vadd.f32 %v3126_v0, %v3122_v47  ;;  %v2014_v32 = vpop.xlane.xlu0 %2013 }
 0x8b9   : > { %v2016_v44 = vadd.f32 %v2014_v32, %v2008_v7 }
 0x8ba   : > { %3134 = vst.msk [vmem:[#allocation4 + $0x20] sm:$0xff] %vm311_vm1, %v3130_v31  ;;  %v4795_v9 = vld [vmem:[#allocation4] sm:$0xff] }
 0x8bb   : > { %2020 = vst.msk [vmem:[#allocation4 + $0x18] sm:$0xff] %vm311_vm1, %v2016_v44  ;;  %v1436_v51 = vpop.permute.xlu1 %1435  ;;  %4799 = vperm.xlu0 %5677, %v4795_v9  }
 0x8bc   : > { %v1443_v30 = vmul.f32 %v5732_v28, %v1436_v51  ;;  %v3129_v56 = vpop.xlane.xlu0 %3128 }
 0x8bd   : > { %v3131_v45 = vadd.f32 %v3129_v56, %v3123_v25  ;;  %v4796_v1 = vld [vmem:[#allocation4 + $0x8] sm:$0xff] }
 0x8be   : > { %v1445_v27 = vadd.f32 %v1443_v30, %v6305_v46  ;;  %4804 = vperm.xlu1 %5676, %v4796_v1   ;;  %v4817_v51 = vld [vmem:[#allocation4 + $0x10] sm:$0xff] }
 0x8bf   : > { %3135 = vst.msk [vmem:[#allocation4 + $0x28] sm:$0xff] %vm311_vm1, %v3131_v45  ;;  %4767 = vperm.xlu0 %5677, %v5707_v6   ;;  %v2542_v48 = vpop.permute.xlu1 %2541 }
 0x8c0   : > { %1447 = vst.msk [vmem:[#allocation2] sm:$0xff] %vm354_vm0, %v1445_v27 }
 0x8c2   : > { %4772 = vperm.xlu1 %5676, %v5709_v41   ;;  %v4818_v9 = vld [vmem:[#allocation4 + $0x18] sm:$0xff] }
 0x8c3   : > { %v2547_v62 = vpop.permute.xlu1 %2546 }
 0x8c6   : > { %v4840_v25 = vld [vmem:[#allocation4 + $0x28] sm:$0xff] }
 0x8c7   : > { %v2537_v24 = vld [vmem:[#allocation2] sm:$0xff] }
 0x8c8   : > { %v2549_v33 = vmul.f32 %v2542_v48, %v2537_v24 }
 0x91a   : > { %v4242_v5 = vpop.xlane.xlu0 %4241 }
 0x91b   : > { %v4244_v19 = vadd.f32 %v4242_v5, %v4236_v17 }
 0x91c   : > { %v4239_v23 = vpop.xlane.xlu1 %4238 }
 0x91d   : > { %4248 = vst.msk [vmem:[#allocation4 + $0x38] sm:$0xff] %vm311_vm1, %v4244_v19  ;;  %v4243_v46 = vadd.f32 %v4239_v23, %v4235_v18 }
 0x91f   : > { %4247 = vst.msk [vmem:[#allocation4 + $0x30] sm:$0xff] %vm311_vm1, %v4243_v46 }
 0x920   : > { %v2556_v54 = vpop.permute.xlu1 %2555 }
 0x922   : > { %v1441_v26 = vpop.permute.xlu0 %1440 }
 0x923   : > { %v1444_v14 = vmul.f32 %v5732_v28, %v1441_v26  ;;  %v4839_v28 = vld [vmem:[#allocation4 + $0x20] sm:$0xff] }
 0x924   : > { %v4862_v30 = vld [vmem:[#allocation4 + $0x38] sm:$0xff] }
 0x925   : > { %v1446_v34 = vadd.f32 %v1444_v14, %v6303_v43  ;;  %v3660_v43 = vpop.permute.xlu1 %3659 }
 0x926   : > { %v2554_v13 = vpop.permute.xlu0 %2553  ;;  %v4861_v56 = vld [vmem:[#allocation4 + $0x30] sm:$0xff] }
 0x927   : > { %1448 = vst.msk [vmem:[#allocation2 + $0x8] sm:$0xff] %vm354_vm0, %v1446_v34  ;;  %v2559_v15 = vadd.f32 %v2554_v13, %v2549_v33 }
 0x929   : > { %2562 = vst.msk [vmem:[#allocation2] sm:$0xff] %vm2561_vm8, %v2559_v15  ;;  %v3669_v3 = vpop.permute.xlu1 %3668 }
 0x92a   : > { %v3655_v58 = vpop.permute.xlu0 %3654 }
 0x92e   : > { %v2538_v49 = vld [vmem:[#allocation2 + $0x8] sm:$0xff]  ;;  %v3667_v11 = vpop.permute.xlu0 %3666 }
 0x92f   : > { %v2550_v52 = vmul.f32 %v2547_v62, %v2538_v49 }
 0x930   : > { %v3650_v59 = vld [vmem:[#allocation2] sm:$0xff] }
 0x931   : > { %v2560_v35 = vadd.f32 %v2556_v54, %v2550_v52  ;;  %v3662_v8 = vmul.f32 %v3655_v58, %v3650_v59 }
 0x933   : > { %2563 = vst.msk [vmem:[#allocation2 + $0x8] sm:$0xff] %vm2561_vm8, %v2560_v35  ;;  %v3672_v12 = vadd.f32 %v3667_v11, %v3662_v8 }
 0x935   : > { %3675 = vst.msk [vmem:[#allocation2] sm:$0xff] %vm3674_vm9, %v3672_v12 }
 0x936   : > { %v4800_v1 = vpop.permute.xlu0 %4799 }
 0x939   : > { %v4805_v45 = vpop.permute.xlu1 %4804 }
 0x93a   : > { %v3651_v60 = vld [vmem:[#allocation2 + $0x8] sm:$0xff]  ;;  %5710 = vrcp.f32 %v4805_v45  ;;  %v4768_v41 = vpop.permute.xlu0 %4767 }
 0x93b   : > { %v3663_v63 = vmul.f32 %v3660_v43, %v3651_v60  ;;  %5712 = vrcp.f32 %v4800_v1 }
 0x93c   : > { %v4763_v48 = vld [vmem:[#allocation2] sm:$0xff] }
 0x93d   : > { %v3673_v10 = vadd.f32 %v3669_v3, %v3663_v63  ;;  %v4773_v6 = vpop.permute.xlu1 %4772  ;;  %v4775_v50 = vmul.f32 %v4768_v41, %v4763_v48 }
 0x93f   : > { %3676 = vst.msk [vmem:[#allocation2 + $0x8] sm:$0xff] %vm3674_vm9, %v3673_v10 }
 0x946   : > { %v4764_v27 = vld [vmem:[#allocation2 + $0x8] sm:$0xff] }
 0x947   : > { %v4776_v57 = vmul.f32 %v4773_v6, %v4764_v27  ;;  %v5711_v18 = vpop.eup %5710 }
 0x948   : > { %v5713_v24 = vpop.eup %5712 }
 0x956   : > { %v5565_v20 = vpop.f32.mrf.mxu1 }
 0x958   : > { %v4425_v16 = vpop.f32.mrf.mxu1 }
 0x95a   : > { %v5579_v22 = vpop.f32.mrf.mxu1 }
 0x95c   : > { %v4589_v21 = vpop.f32.mrf.mxu1 }
 0x95e   : > { %v5558_v40 = vpop.f32.mrf.mxu0  ;;  %v5593_v4 = vpop.f32.mrf.mxu1 }
 0x95f   : > { %v4432_v36 = vadd.f32 %v5565_v20, %v5558_v40 }
 0x960   : > { %v4334_v38 = vpop.f32.mrf.mxu0  ;;  %v4753_v53 = vpop.f32.mrf.mxu1 }
 0x961   : > { %v4426_v29 = vadd.f32 %v4425_v16, %v4334_v38 }
 0x962   : > { %v5572_v42 = vpop.f32.mrf.mxu0 }
 0x963   : > { %v4515_v39 = vadd.f32 %v5572_v42, %v4432_v36 }
 0x964   : > { %v4507_v55 = vpop.f32.mrf.mxu0 }
 0x965   : > { %v4508_v2 = vadd.f32 %v4507_v55, %v4426_v29  ;;  %v4598_v61 = vadd.f32 %v5579_v22, %v4515_v39 }
 0x966   : > { %v5586_v37 = vpop.f32.mrf.mxu0 }
 0x967   : > { %v4681_v47 = vadd.f32 %v5586_v37, %v4598_v61  ;;  %v4590_v0 = vadd.f32 %v4589_v21, %v4508_v2 }
 0x968   : > { %v4674_v7 = vpop.f32.mrf.mxu0 }
 0x969   : > { %v4760_v31 = vadd.f32 %v5593_v4, %v4681_v47  ;;  %v4675_v32 = vadd.f32 %v4674_v7, %v4590_v0 }
 0x96b   : > { %v4754_v44 = vadd.f32 %v4753_v53, %v4675_v32  ;;  %4781 = vrot.lane.b32.xlu1 %v4760_v31, %s5910_s18 }
 0x96d   : > { %4779 = vrot.lane.b32.xlu0 %v4754_v44, %s5910_s18 }
 0x96f   : > { %4826 = vperm.xlu1 %5676, %v4818_v9  }
 0x971   : > { %4821 = vperm.xlu0 %5677, %v4817_v51  }
 0x973   : > { %4848 = vperm.xlu1 %5676, %v4840_v25  }
 0x975   : > { %4843 = vperm.xlu0 %5677, %v4839_v28  }
 0x977   : > { %4870 = vperm.xlu1 %5676, %v4862_v30  }
 0x979   : > { %4865 = vperm.xlu0 %5677, %v4861_v56  }
 0x9dd   : > { %v4782_v62 = vpop.permute.xlu1 %4781 }
 0x9de   : > { %v4786_v17 = vadd.f32 %v4782_v62, %v4776_v57 }
 0x9df   : > { %v4780_v5 = vpop.permute.xlu0 %4779 }
 0x9e0   : > { %4789 = vst.msk [vmem:[#allocation2 + $0x8] sm:$0xff] %vm4787_vm10, %v4786_v17  ;;  %v4785_v19 = vadd.f32 %v4780_v5, %v4775_v50 }
 0x9e2   : > { %4788 = vst.msk [vmem:[#allocation2] sm:$0xff] %vm4787_vm10, %v4785_v19 }
 0x9e7   : > { %v4794_v23 = vld [vmem:[#allocation2 + $0x8] sm:$0xff] }
 0x9e8   : > { %v4810_v46 = vmul.f32 %v5711_v18, %v4794_v23 }
 0x9e9   : > { %v4793_v26 = vld [vmem:[#allocation2] sm:$0xff] }
 0x9ea   : > { %4813 = vst.msk [vmem:[#allocation2 + $0x8] sm:$0xff] %vm354_vm0, %v4810_v46  ;;  %v4808_v14 = vmul.f32 %v5713_v24, %v4793_v26  ;;  %v4827_v33 = vpop.permute.xlu1 %4826 }
 0x9eb   : > { %5714 = vrcp.f32 %v4827_v33 }
 0x9ec   : > { %4812 = vst.msk [vmem:[#allocation2] sm:$0xff] %vm354_vm0, %v4808_v14  ;;  %v4822_v34 = vpop.permute.xlu0 %4821 }
 0x9ed   : > { %5716 = vrcp.f32 %v4822_v34 }
 0x9ee   : > { %v4849_v13 = vpop.permute.xlu1 %4848 }
 0x9ef   : > { %5718 = vrcp.f32 %v4849_v13 }
 0x9f0   : > { %v4844_v15 = vpop.permute.xlu0 %4843 }
 0x9f1   : > { %5720 = vrcp.f32 %v4844_v15  ;;  %v4815_v49 = vld [vmem:[#allocation2 + $0x8] sm:$0xff] }
 0x9f2   : > { %v4871_v8 = vpop.permute.xlu1 %4870 }
 0x9f3   : > { %v4814_v59 = vld [vmem:[#allocation2] sm:$0xff]  ;;  %5722 = vrcp.f32 %v4871_v8 }
 0x9f4   : > { %v4866_v11 = vpop.permute.xlu0 %4865 }
 0x9f5   : > { %5724 = vrcp.f32 %v4866_v11 }
 0x9f8   : > { %v5715_v58 = vpop.eup %5714 }
 0x9f9   : > { %v4832_v52 = vmul.f32 %v5715_v58, %v4815_v49 }
 0x9fa   : > { %v5717_v54 = vpop.eup %5716 }
 0x9fb   : > { %4835 = vst.msk [vmem:[#allocation2 + $0x8] sm:$0xff] %vm2561_vm8, %v4832_v52  ;;  %v4830_v35 = vmul.f32 %v5717_v54, %v4814_v59 }
 0x9fc   : > { %v5719_v12 = vpop.eup %5718 }
 0x9fd   : > { %4834 = vst.msk [vmem:[#allocation2] sm:$0xff] %vm2561_vm8, %v4830_v35 }
 0x9fe   : > { %v5721_v63 = vpop.eup %5720 }
 0xa00   : > { %v5723_v20 = vpop.eup %5722 }
 0xa02   : > { %v4837_v43 = vld [vmem:[#allocation2 + $0x8] sm:$0xff]  ;;  %v5725_v40 = vpop.eup %5724 }
 0xa03   : > { %v4854_v60 = vmul.f32 %v5719_v12, %v4837_v43 }
 0xa04   : > { %v4836_v3 = vld [vmem:[#allocation2] sm:$0xff] }
 0xa05   : > { %4857 = vst.msk [vmem:[#allocation2 + $0x8] sm:$0xff] %vm3674_vm9, %v4854_v60  ;;  %v4852_v10 = vmul.f32 %v5721_v63, %v4836_v3 }
 0xa07   : > { %4856 = vst.msk [vmem:[#allocation2] sm:$0xff] %vm3674_vm9, %v4852_v10 }
 0xa0c   : > { %v4859_v16 = vld [vmem:[#allocation2 + $0x8] sm:$0xff] }
 0xa0d   : > { %v4876_v22 = vmul.f32 %v5723_v20, %v4859_v16 }
 0xa0e   : > { %v4858_v38 = vld [vmem:[#allocation2] sm:$0xff] }
 0xa0f   : > { %4879 = vst.msk [vmem:[#allocation2 + $0x8] sm:$0xff] %vm4787_vm10, %v4876_v22  ;;  %v4874_v36 = vmul.f32 %v5725_v40, %v4858_v38 }
 0xa11   : > { %4878 = vst.msk [vmem:[#allocation2] sm:$0xff] %vm4787_vm10, %v4874_v36 }
 0xa16   : > { %v4881_v21 = vld [vmem:[#allocation2 + $0x8] sm:$0xff] }
 0xa17   : > { %4883 = vst [vmem:[%s298_s1 + $0x8] sm:$0xff] %v4881_v21 }
 0xa18   : > { %v4880_v42 = vld [vmem:[#allocation2] sm:$0xff] }
 0xa19   : > { %4882 = vst [vmem:[%s298_s1] sm:$0xff] %v4880_v42 }
 0xa1a   : > { %5830 = shalt.err (!%p5827_p12)
}
 0xa1b   : > { %s5831_s4 = scalar_lea.hbm %s6691_s6, 256  ;;  %s5835_s20 = scalar_lea.hbm %s6744_s3, 512 }
 0xa1c   : > { %p5832_p1 = scmp.ne.s32.totalorder %s6691_s6, %s5831_s4  ;;  %p5836_p6 = scmp.lt.s32.totalorder %s6691_s6, %s6744_s3 }
 0xa1d   : > { %p5837_p7 = scmp.lt.s32.totalorder %s5835_s20, %s5831_s4 }
 0xa1e   : > { %p5833_p2 = pnand %p5832_p1, %p5992_p9 }
 0xa1f   : > { %p5838_p8 = por %p5837_p7, %p5836_p6 }
 0xa20   : > { %p5834_p5 = pneg %p5833_p2 }
 0xa22   : > { %p5839_p0 = pnand %p5838_p8, %p5834_p5 }
 0xa24   : > { %5842 = shalt.err (!%p5839_p0)
}
 0xa25   : > { %s5915_s18 = smov 128   ;;  %s5916_s24 = smov 8  }
 0xa26   : > { %5600 = dma.vmem_to_hbm [thread:$0]  (%p5992_p9), %s6693_s16, 256, %s6691_s6, %s4885_s22, %s5915_s18, %s5915_s18, %s5916_s24  }
 0xa27 PF: > { %s4915_s5 = sand.u32 1, %s5881_s12   ;;  %p6767_p3 = scmp.ge.s32.totalorder %s5901_s17, 2 }
 0xa28   : > { %s4916_s7 = scalar_lea.sflag [#allocation7], %s4915_s5 }
 0xa29   : > { %p5613_p4 = pnand %p6767_p3, %p5999_p11 }
 0xa2b   : > { %p5614_p10 = pneg %p5613_p4 }
 0xa2d   : > { %5876 = dma.done.wait (%p5614_p10), %s4916_s7, 256  }
 0xa2e   : > { %5878 = vsyncadd (%p5614_p10), %s4916_s7, 4294967040  ;;  %s22_s17 = sadd.s32 1, %s5901_s17   ;;  %s6768_s25 = sld [smem:[#allocation17_spill]] }
 0xa2f   : > { %p19_p13 = scmp.ge.s32.totalorder %s22_s17, 4   ;;  %s6769_s15 = sld [smem:[#allocation15_spill]] }
 0xa30   : > { %s6770_s16 = sld [smem:[#allocation16_spill]]  ;;  %s6771_s12 = smov %s5885_s13 }
 0xa31   : > { %s6772_s13 = smov %s5889_s14  ;;  %21 = sbr.rel (!%p19_p13) target bundleno = 10 (0xa), region = 122 }
 0xa34   : > { %s6773_s14 = smov %s6768_s25 }
 0xa36   :  { %4921 = vsyncpa [#allocation6], 1 }
 0xa37   :  { %4923 = vsyncpa [#allocation6 + $0x1], 1 }
 0xa38   :  { %4924 = vsyncpa [#allocation9], 1 }
 0xa39   :  { %4926 = vsyncpa [#allocation9 + $0x1], 1 }
 0xa3a   :  { %4927 = vsyncpa [#allocation7], 1 }
 0xa3b   :  { %4929 = vsyncpa [#allocation7 + $0x1], 1 }

</bundles_post_ra>
